<compile_context>
chip_gen: v5e
topology: v5e:2x2
jax: 0.10.0
libtpu: 0.0.40
codegen_flags: <defaults>
</compile_context>

<pallas_src>
import functools
import math

import jax
import jax.numpy as jnp
from jax.experimental import pallas as pl
from jax.experimental.pallas import tpu as pltpu

# ----------------------------- config (small) -----------------------------
HIDDEN = 128
N_HEADS = 4
HEAD_DIM = HIDDEN // N_HEADS
N_LAYERS = 2
FFN = 256
VOCAB = 100
TYPE_VOCAB = 2
MAX_POS = 64
N_CLASSES = 2
CLS_PAD = 128          # lane-dense padded classifier width (slice [:, :2] outside)
SEQ = 8
BATCH = 2
LN_EPS = 1e-5


# ----------------------------- fused kernel -----------------------------
def _roberta_fused_kernel(
        x_ref, bias_ref, emb_g_ref, emb_b_ref,
        wqkv_ref, bqkv_ref, wo_ref, bo_ref, ln1g_ref, ln1b_ref,
        w1_ref, b1_ref, w2_ref, b2_ref, ln2g_ref, ln2b_ref,
        pre_w_ref, pre_b_ref, cls_w_ref, cls_b_ref,
        o_ref, *, n_layers, n_heads, head_dim, scale, eps):
    """Whole RobertaClass forward for one batch element's (S, H) tile."""

    def layer_norm(y, g, b):
        mean = jnp.mean(y, axis=-1, keepdims=True)
        var = jnp.mean((y - mean) ** 2, axis=-1, keepdims=True)
        return (y - mean) * jax.lax.rsqrt(var + eps) * g + b

    # ---- embeddings LayerNorm ----
    x = x_ref[...].astype(jnp.float32)                               # (S, H)
    h = layer_norm(x, emb_g_ref[...], emb_b_ref[...])

    bias = bias_ref[0]                                               # (1, S) additive key mask
    h_all = n_heads * head_dim

    # ---- encoder layers (statically unrolled; weights resident in VMEM) ----
    for l in range(n_layers):
        # --- attention sub-block ---
        qkv = jnp.dot(h.astype(jnp.bfloat16), wqkv_ref[l],
                      preferred_element_type=jnp.float32) + bqkv_ref[l]      # (S, 3H)
        q = qkv[:, :h_all]
        k = qkv[:, h_all:2 * h_all]
        v = qkv[:, 2 * h_all:]

        ctx_heads = []
        for hd in range(n_heads):                                    # statically unrolled
            lo, hi = hd * head_dim, (hd + 1) * head_dim
            qh = q[:, lo:hi].astype(jnp.bfloat16)                    # (S, D)
            kh = k[:, lo:hi].astype(jnp.bfloat16)
            vh = v[:, lo:hi].astype(jnp.bfloat16)
            s = jax.lax.dot_general(qh, kh, (((1,), (1,)), ((), ())),
                                    preferred_element_type=jnp.float32) * scale  # (S, S)
            s = s + bias
            m = jnp.max(s, axis=-1, keepdims=True)
            p = jnp.exp(s - m)
            denom = jnp.sum(p, axis=-1, keepdims=True)
            p = p * pl.reciprocal(denom, approx=True)                # EUP, nearly free
            ctx_heads.append(jnp.dot(p.astype(jnp.bfloat16), vh,
                                     preferred_element_type=jnp.float32))     # (S, D)
        ctx = jnp.concatenate(ctx_heads, axis=-1)                    # (S, H)

        attn = jnp.dot(ctx.astype(jnp.bfloat16), wo_ref[l],
                       preferred_element_type=jnp.float32) + bo_ref[l]
        h = layer_norm(attn + h, ln1g_ref[l], ln1b_ref[l])

        # --- FFN sub-block ---
        h1 = jnp.dot(h.astype(jnp.bfloat16), w1_ref[l],
                     preferred_element_type=jnp.float32) + b1_ref[l]          # (S, FFN)
        # TODO(synk): HF RoBERTa uses erf-form GELU; tanh approximation kept here.
        c = math.sqrt(2.0 / math.pi)
        h1 = 0.5 * h1 * (1.0 + jnp.tanh(c * (h1 + 0.044715 * h1 * h1 * h1)))
        h2 = jnp.dot(h1.astype(jnp.bfloat16), w2_ref[l],
                     preferred_element_type=jnp.float32) + b2_ref[l]          # (S, H)
        h = layer_norm(h2 + h, ln2g_ref[l], ln2b_ref[l])

    # ---- classifier head: pre_classifier + ReLU + Dropout(identity) + classifier ----
    # Applied to all S rows (same MXU cost as one row since S <= 8 sublanes);
    # row 0 (CLS) is selected outside the kernel.
    y = jnp.dot(h.astype(jnp.bfloat16), pre_w_ref[...],
                preferred_element_type=jnp.float32) + pre_b_ref[...]          # (S, H)
    y = jnp.maximum(y, 0.0)                                          # ReLU
    # Dropout(0.3): identity at inference (PyTorch eval-mode semantics).
    # TODO(synk): training-mode stochastic dropout (pltpu.prng_*) not implemented.
    logits = jnp.dot(y.astype(jnp.bfloat16), cls_w_ref[...],
                     preferred_element_type=jnp.float32) + cls_b_ref[...]     # (S, CLS_PAD)
    o_ref[...] = logits.astype(o_ref.dtype)


def _const_spec(arr):
    """Whole-array block, fetched once and kept resident across grid steps."""
    n = arr.ndim
    return pl.BlockSpec(arr.shape, lambda b, _n=n: (0,) * _n)


def roberta_fused(x_emb, mask_bias, params, *, batch, seq):
    """One pallas_call for the whole model (post-embedding-gather)."""
    scale = 1.0 / math.sqrt(HEAD_DIM)
    kernel = functools.partial(_roberta_fused_kernel, n_layers=N_LAYERS,
                               n_heads=N_HEADS, head_dim=HEAD_DIM,
                               scale=scale, eps=LN_EPS)
    weight_args = (
        params["emb_ln_g"], params["emb_ln_b"],
        params["wqkv"], params["bqkv"], params["wo"], params["bo"],
        params["ln1_g"], params["ln1_b"],
        params["w1"], params["b1"], params["w2"], params["b2"],
        params["ln2_g"], params["ln2_b"],
        params["pre_w"], params["pre_b"],
        params["cls_w_pad"], params["cls_b_pad"],
    )
    return pl.pallas_call(
        kernel,
        out_shape=jax.ShapeDtypeStruct((batch * seq, CLS_PAD), jnp.float32),
        grid=(batch,),
        in_specs=[
            pl.BlockSpec((seq, HIDDEN), lambda b: (b, 0)),           # token activations
            pl.BlockSpec((1, 1, seq), lambda b: (b, 0, 0)),          # additive mask bias
        ] + [_const_spec(w) for w in weight_args],
        out_specs=pl.BlockSpec((seq, CLS_PAD), lambda b: (b, 0)),
        compiler_params=pltpu.CompilerParams(
            dimension_semantics=("parallel",)),
    )(x_emb, mask_bias, *weight_args)


# ----------------------------- parameters -----------------------------
def init_params(key):
    keys = iter(jax.random.split(key, 64))

    def w(shape, scale=0.02):
        return (scale * jax.random.normal(next(keys), shape)).astype(jnp.float32)

    def bf(x):
        return x.astype(jnp.bfloat16)      # bf16 weights: MXU-native, half the DMA bytes

    params = {
        "word_emb": w((VOCAB, HIDDEN)),
        "pos_emb": w((MAX_POS, HIDDEN)),
        "type_emb": w((TYPE_VOCAB, HIDDEN)),
        "emb_ln_g": jnp.ones((1, HIDDEN), jnp.float32),
        "emb_ln_b": jnp.zeros((1, HIDDEN), jnp.float32),
        # pre_classifier: Linear(768, 768) analogue
        "pre_w": bf(w((HIDDEN, HIDDEN))),
        "pre_b": jnp.zeros((1, HIDDEN), jnp.float32),
    }
    # classifier: Linear(768, 2) analogue, zero-padded to lane-dense 128 columns
    cls_w = w((HIDDEN, N_CLASSES))
    params["cls_w_pad"] = bf(jnp.pad(cls_w, ((0, 0), (0, CLS_PAD - N_CLASSES))))
    params["cls_b_pad"] = jnp.zeros((1, CLS_PAD), jnp.float32)

    # Encoder layer weights stacked along a leading layer axis.
    wqkv, wo, w1, w2 = [], [], [], []
    for _ in range(N_LAYERS):
        wq, wk, wv = w((HIDDEN, HIDDEN)), w((HIDDEN, HIDDEN)), w((HIDDEN, HIDDEN))
        wqkv.append(jnp.concatenate([wq, wk, wv], axis=1))           # (H, 3H) fused QKV
        wo.append(w((HIDDEN, HIDDEN)))
        w1.append(w((HIDDEN, FFN)))
        w2.append(w((FFN, HIDDEN)))
    params["wqkv"] = bf(jnp.stack(wqkv))                              # (L, H, 3H)
    params["bqkv"] = jnp.zeros((N_LAYERS, 1, 3 * HIDDEN), jnp.float32)
    params["wo"] = bf(jnp.stack(wo))                                  # (L, H, H)
    params["bo"] = jnp.zeros((N_LAYERS, 1, HIDDEN), jnp.float32)
    params["ln1_g"] = jnp.ones((N_LAYERS, 1, HIDDEN), jnp.float32)
    params["ln1_b"] = jnp.zeros((N_LAYERS, 1, HIDDEN), jnp.float32)
    params["w1"] = bf(jnp.stack(w1))                                  # (L, H, FFN)
    params["b1"] = jnp.zeros((N_LAYERS, 1, FFN), jnp.float32)
    params["w2"] = bf(jnp.stack(w2))                                  # (L, FFN, H)
    params["b2"] = jnp.zeros((N_LAYERS, 1, HIDDEN), jnp.float32)
    params["ln2_g"] = jnp.ones((N_LAYERS, 1, HIDDEN), jnp.float32)
    params["ln2_b"] = jnp.zeros((N_LAYERS, 1, HIDDEN), jnp.float32)
    return params


# ----------------------------- forward -----------------------------
def roberta_class_forward(params, input_ids, attention_mask, token_type_ids):
    B, S = input_ids.shape

    # Embedding gathers are glue, kept in plain JAX; everything else is one kernel.
    # Note: real RoBERTa offsets positions by padding_idx+1; synthetic model uses 0-based.
    positions = jnp.arange(S)[None, :]
    x = (params["word_emb"][input_ids]
         + params["pos_emb"][positions]
         + params["type_emb"][token_type_ids])                       # (B, S, H)
    x = x.reshape(B * S, HIDDEN).astype(jnp.float32)

    # Loop-invariant additive mask bias: (B, 1, S), 0 = keep, -1e9 = drop.
    mask_bias = ((1.0 - attention_mask.astype(jnp.float32)) * (-1e9)).reshape(B, 1, S)

    # Single fused kernel: emb-LN, all encoder layers, head. Writes (B*S, 128) logits.
    logits_pad = roberta_fused(x, mask_bias, params, batch=B, seq=S)

    # Row 0 of each batch element (= CLS token) and the 2 real classes.
    return logits_pad.reshape(B, S, CLS_PAD)[:, 0, :N_CLASSES]


# ----------------------------- main -----------------------------
if __name__ == "__main__":
    key = jax.random.PRNGKey(0)
    k_param, k_ids = jax.random.split(key)

    params = init_params(k_param)

    input_ids = jax.random.randint(k_ids, (BATCH, SEQ), 0, VOCAB, dtype=jnp.int32)
    attention_mask = jnp.array(
        [[1] * SEQ, [1] * (SEQ - 2) + [0] * 2], dtype=jnp.int32)
    token_type_ids = jnp.zeros((BATCH, SEQ), dtype=jnp.int32)

    fwd = jax.jit(roberta_class_forward)
    logits = fwd(params, input_ids, attention_mask, token_type_ids)
    logits = jax.block_until_ready(logits)
    assert logits.shape == (BATCH, N_CLASSES)
    print("KERNEL_OK")
</pallas_src>

<mosaic_0001>
module attributes {stable_mosaic.version = 11 : i64} {
  func.func @_roberta_fused_kernel(%arg0: i32, %arg1: memref<8x128xf32, #tpu.memory_space<vmem>>, %arg2: memref<1x1x8xf32, #tpu.memory_space<vmem>>, %arg3: memref<1x128xf32, #tpu.memory_space<vmem>>, %arg4: memref<1x128xf32, #tpu.memory_space<vmem>>, %arg5: memref<2x128x384xbf16, #tpu.memory_space<vmem>>, %arg6: memref<2x1x384xf32, #tpu.memory_space<vmem>>, %arg7: memref<2x128x128xbf16, #tpu.memory_space<vmem>>, %arg8: memref<2x1x128xf32, #tpu.memory_space<vmem>>, %arg9: memref<2x1x128xf32, #tpu.memory_space<vmem>>, %arg10: memref<2x1x128xf32, #tpu.memory_space<vmem>>, %arg11: memref<2x128x256xbf16, #tpu.memory_space<vmem>>, %arg12: memref<2x1x256xf32, #tpu.memory_space<vmem>>, %arg13: memref<2x256x128xbf16, #tpu.memory_space<vmem>>, %arg14: memref<2x1x128xf32, #tpu.memory_space<vmem>>, %arg15: memref<2x1x128xf32, #tpu.memory_space<vmem>>, %arg16: memref<2x1x128xf32, #tpu.memory_space<vmem>>, %arg17: memref<128x128xbf16, #tpu.memory_space<vmem>>, %arg18: memref<1x128xf32, #tpu.memory_space<vmem>>, %arg19: memref<128x128xbf16, #tpu.memory_space<vmem>>, %arg20: memref<1x128xf32, #tpu.memory_space<vmem>>, %arg21: memref<8x128xf32, #tpu.memory_space<vmem>>) attributes {dimension_semantics = [#tpu.dimension_semantics<parallel>], iteration_bounds = array<i64: 2>, scalar_prefetch = 0 : i64, scratch_operands = 0 : i64, tpu.core_type = #tpu.core_type<tc>, window_params = [{transform_indices = @transform_0, window_bounds = array<i64: 8, 128>}, {transform_indices = @transform_1, window_bounds = array<i64: 1, 1, 8>}, {pipeline_mode = #tpu.pipeline_mode<synchronous>, transform_indices = @transform_2, window_bounds = array<i64: 1, 128>}, {pipeline_mode = #tpu.pipeline_mode<synchronous>, transform_indices = @transform_3, window_bounds = array<i64: 1, 128>}, {pipeline_mode = #tpu.pipeline_mode<synchronous>, transform_indices = @transform_4, window_bounds = array<i64: 2, 128, 384>}, {pipeline_mode = #tpu.pipeline_mode<synchronous>, transform_indices = @transform_5, window_bounds = array<i64: 2, 1, 384>}, {pipeline_mode = #tpu.pipeline_mode<synchronous>, transform_indices = @transform_6, window_bounds = array<i64: 2, 128, 128>}, {pipeline_mode = #tpu.pipeline_mode<synchronous>, transform_indices = @transform_7, window_bounds = array<i64: 2, 1, 128>}, {pipeline_mode = #tpu.pipeline_mode<synchronous>, transform_indices = @transform_8, window_bounds = array<i64: 2, 1, 128>}, {pipeline_mode = #tpu.pipeline_mode<synchronous>, transform_indices = @transform_9, window_bounds = array<i64: 2, 1, 128>}, {pipeline_mode = #tpu.pipeline_mode<synchronous>, transform_indices = @transform_10, window_bounds = array<i64: 2, 128, 256>}, {pipeline_mode = #tpu.pipeline_mode<synchronous>, transform_indices = @transform_11, window_bounds = array<i64: 2, 1, 256>}, {pipeline_mode = #tpu.pipeline_mode<synchronous>, transform_indices = @transform_12, window_bounds = array<i64: 2, 256, 128>}, {pipeline_mode = #tpu.pipeline_mode<synchronous>, transform_indices = @transform_13, window_bounds = array<i64: 2, 1, 128>}, {pipeline_mode = #tpu.pipeline_mode<synchronous>, transform_indices = @transform_14, window_bounds = array<i64: 2, 1, 128>}, {pipeline_mode = #tpu.pipeline_mode<synchronous>, transform_indices = @transform_15, window_bounds = array<i64: 2, 1, 128>}, {pipeline_mode = #tpu.pipeline_mode<synchronous>, transform_indices = @transform_16, window_bounds = array<i64: 128, 128>}, {pipeline_mode = #tpu.pipeline_mode<synchronous>, transform_indices = @transform_17, window_bounds = array<i64: 1, 128>}, {pipeline_mode = #tpu.pipeline_mode<synchronous>, transform_indices = @transform_18, window_bounds = array<i64: 128, 128>}, {pipeline_mode = #tpu.pipeline_mode<synchronous>, transform_indices = @transform_19, window_bounds = array<i64: 1, 128>}, {transform_indices = @transform_20, window_bounds = array<i64: 8, 128>}]} {
    %c0 = arith.constant 0 : index
    %c0_0 = arith.constant 0 : index
    %0 = vector.load %arg1[%c0, %c0_0] : memref<8x128xf32, #tpu.memory_space<vmem>>, vector<8x128xf32>
    %c0_1 = arith.constant 0 : index
    %c0_2 = arith.constant 0 : index
    %1 = vector.load %arg3[%c0_1, %c0_2] : memref<1x128xf32, #tpu.memory_space<vmem>>, vector<1x128xf32>
    %c0_3 = arith.constant 0 : index
    %c0_4 = arith.constant 0 : index
    %2 = vector.load %arg4[%c0_3, %c0_4] : memref<1x128xf32, #tpu.memory_space<vmem>>, vector<1x128xf32>
    %cst = arith.constant dense<0.000000e+00> : vector<8xf32>
    %3 = vector.multi_reduction <add>, %0, %cst [1] : vector<8x128xf32> to vector<8xf32>
    %4 = vector.shape_cast %3 : vector<8xf32> to vector<8x1xf32>
    %cst_5 = arith.constant 1.280000e+02 : f32
    %5 = vector.broadcast %cst_5 : f32 to vector<8x1xf32>
    %6 = arith.divf %4, %5 : vector<8x1xf32>
    %7 = vector.broadcast %6 : vector<8x1xf32> to vector<8x128xf32>
    %8 = arith.subf %0, %7 : vector<8x128xf32>
    %9 = arith.mulf %8, %8 : vector<8x128xf32>
    %cst_6 = arith.constant dense<0.000000e+00> : vector<8xf32>
    %10 = vector.multi_reduction <add>, %9, %cst_6 [1] : vector<8x128xf32> to vector<8xf32>
    %11 = vector.shape_cast %10 : vector<8xf32> to vector<8x1xf32>
    %cst_7 = arith.constant 1.280000e+02 : f32
    %12 = vector.broadcast %cst_7 : f32 to vector<8x1xf32>
    %13 = arith.divf %11, %12 : vector<8x1xf32>
    %14 = vector.broadcast %6 : vector<8x1xf32> to vector<8x128xf32>
    %15 = arith.subf %0, %14 : vector<8x128xf32>
    %cst_8 = arith.constant 9.99999974E-6 : f32
    %16 = vector.broadcast %cst_8 : f32 to vector<8x1xf32>
    %17 = arith.addf %13, %16 : vector<8x1xf32>
    %18 = math.rsqrt %17 : vector<8x1xf32>
    %19 = vector.broadcast %18 : vector<8x1xf32> to vector<8x128xf32>
    %20 = arith.mulf %15, %19 : vector<8x128xf32>
    %21 = vector.broadcast %1 : vector<1x128xf32> to vector<8x128xf32>
    %22 = arith.mulf %20, %21 : vector<8x128xf32>
    %23 = vector.broadcast %2 : vector<1x128xf32> to vector<8x128xf32>
    %24 = arith.addf %22, %23 : vector<8x128xf32>
    %c0_9 = arith.constant 0 : index
    %c0_10 = arith.constant 0 : index
    %c0_11 = arith.constant 0 : index
    %25 = vector.load %arg2[%c0_9, %c0_10, %c0_11] : memref<1x1x8xf32, #tpu.memory_space<vmem>>, vector<1x1x8xf32>
    %26 = vector.shape_cast %25 : vector<1x1x8xf32> to vector<1x8xf32>
    %27 = arith.truncf %24 : vector<8x128xf32> to vector<8x128xbf16>
    %c0_12 = arith.constant 0 : index
    %c0_13 = arith.constant 0 : index
    %c0_14 = arith.constant 0 : index
    %28 = vector.load %arg5[%c0_12, %c0_13, %c0_14] : memref<2x128x384xbf16, #tpu.memory_space<vmem>>, vector<1x128x384xbf16>
    %29 = vector.shape_cast %28 : vector<1x128x384xbf16> to vector<128x384xbf16>
    %cst_15 = arith.constant dense<0.000000e+00> : vector<8x384xf32>
    %30 = tpu.matmul %27, %29, %cst_15 {dimension_numbers = #tpu.dot_dimension_numbers<[1], [0], [0], [1], [0, 0, 1, 1], [], []>} : vector<8x128xbf16>, vector<128x384xbf16>, vector<8x384xf32> -> vector<8x384xf32>
    %c0_16 = arith.constant 0 : index
    %c0_17 = arith.constant 0 : index
    %c0_18 = arith.constant 0 : index
    %31 = vector.load %arg6[%c0_16, %c0_17, %c0_18] : memref<2x1x384xf32, #tpu.memory_space<vmem>>, vector<1x1x384xf32>
    %32 = vector.shape_cast %31 : vector<1x1x384xf32> to vector<1x384xf32>
    %33 = vector.broadcast %32 : vector<1x384xf32> to vector<8x384xf32>
    %34 = arith.addf %30, %33 : vector<8x384xf32>
    %35 = vector.extract_strided_slice %34 {offsets = [0, 0], sizes = [8, 128], strides = [1, 1]} : vector<8x384xf32> to vector<8x128xf32>
    %36 = vector.extract_strided_slice %34 {offsets = [0, 128], sizes = [8, 128], strides = [1, 1]} : vector<8x384xf32> to vector<8x128xf32>
    %37 = vector.extract_strided_slice %34 {offsets = [0, 256], sizes = [8, 128], strides = [1, 1]} : vector<8x384xf32> to vector<8x128xf32>
    %38 = vector.extract_strided_slice %35 {offsets = [0, 0], sizes = [8, 32], strides = [1, 1]} : vector<8x128xf32> to vector<8x32xf32>
    %39 = arith.truncf %38 : vector<8x32xf32> to vector<8x32xbf16>
    %40 = vector.extract_strided_slice %36 {offsets = [0, 0], sizes = [8, 32], strides = [1, 1]} : vector<8x128xf32> to vector<8x32xf32>
    %41 = arith.truncf %40 : vector<8x32xf32> to vector<8x32xbf16>
    %42 = vector.extract_strided_slice %37 {offsets = [0, 0], sizes = [8, 32], strides = [1, 1]} : vector<8x128xf32> to vector<8x32xf32>
    %43 = arith.truncf %42 : vector<8x32xf32> to vector<8x32xbf16>
    %cst_19 = arith.constant dense<0.000000e+00> : vector<8x8xf32>
    %44 = tpu.matmul %39, %41, %cst_19 {dimension_numbers = #tpu.dot_dimension_numbers<[1], [1], [0], [0], [0, 0, 1, 0], [], []>} : vector<8x32xbf16>, vector<8x32xbf16>, vector<8x8xf32> -> vector<8x8xf32>
    %cst_20 = arith.constant 0.176776692 : f32
    %45 = vector.broadcast %cst_20 : f32 to vector<8x8xf32>
    %46 = arith.mulf %44, %45 : vector<8x8xf32>
    %47 = vector.broadcast %26 : vector<1x8xf32> to vector<8x8xf32>
    %48 = arith.addf %46, %47 : vector<8x8xf32>
    %cst_21 = arith.constant dense<0xFF800000> : vector<8xf32>
    %49 = vector.multi_reduction <maximumf>, %48, %cst_21 [1] : vector<8x8xf32> to vector<8xf32>
    %50 = vector.shape_cast %49 : vector<8xf32> to vector<8x1xf32>
    %51 = vector.broadcast %50 : vector<8x1xf32> to vector<8x8xf32>
    %52 = arith.subf %48, %51 : vector<8x8xf32>
    %53 = math.exp %52 : vector<8x8xf32>
    %cst_22 = arith.constant dense<0.000000e+00> : vector<8xf32>
    %54 = vector.multi_reduction <add>, %53, %cst_22 [1] : vector<8x8xf32> to vector<8xf32>
    %55 = vector.shape_cast %54 : vector<8xf32> to vector<8x1xf32>
    %56 = tpu.reciprocal %55 {approx = true} : vector<8x1xf32> -> vector<8x1xf32>
    %57 = vector.broadcast %56 : vector<8x1xf32> to vector<8x8xf32>
    %58 = arith.mulf %53, %57 : vector<8x8xf32>
    %59 = arith.truncf %58 : vector<8x8xf32> to vector<8x8xbf16>
    %cst_23 = arith.constant dense<0.000000e+00> : vector<8x32xf32>
    %60 = tpu.matmul %59, %43, %cst_23 {dimension_numbers = #tpu.dot_dimension_numbers<[1], [0], [0], [1], [0, 0, 1, 1], [], []>} : vector<8x8xbf16>, vector<8x32xbf16>, vector<8x32xf32> -> vector<8x32xf32>
    %61 = vector.extract_strided_slice %35 {offsets = [0, 32], sizes = [8, 32], strides = [1, 1]} : vector<8x128xf32> to vector<8x32xf32>
    %62 = arith.truncf %61 : vector<8x32xf32> to vector<8x32xbf16>
    %63 = vector.extract_strided_slice %36 {offsets = [0, 32], sizes = [8, 32], strides = [1, 1]} : vector<8x128xf32> to vector<8x32xf32>
    %64 = arith.truncf %63 : vector<8x32xf32> to vector<8x32xbf16>
    %65 = vector.extract_strided_slice %37 {offsets = [0, 32], sizes = [8, 32], strides = [1, 1]} : vector<8x128xf32> to vector<8x32xf32>
    %66 = arith.truncf %65 : vector<8x32xf32> to vector<8x32xbf16>
    %cst_24 = arith.constant dense<0.000000e+00> : vector<8x8xf32>
    %67 = tpu.matmul %62, %64, %cst_24 {dimension_numbers = #tpu.dot_dimension_numbers<[1], [1], [0], [0], [0, 0, 1, 0], [], []>} : vector<8x32xbf16>, vector<8x32xbf16>, vector<8x8xf32> -> vector<8x8xf32>
    %cst_25 = arith.constant 0.176776692 : f32
    %68 = vector.broadcast %cst_25 : f32 to vector<8x8xf32>
    %69 = arith.mulf %67, %68 : vector<8x8xf32>
    %70 = vector.broadcast %26 : vector<1x8xf32> to vector<8x8xf32>
    %71 = arith.addf %69, %70 : vector<8x8xf32>
    %cst_26 = arith.constant dense<0xFF800000> : vector<8xf32>
    %72 = vector.multi_reduction <maximumf>, %71, %cst_26 [1] : vector<8x8xf32> to vector<8xf32>
    %73 = vector.shape_cast %72 : vector<8xf32> to vector<8x1xf32>
    %74 = vector.broadcast %73 : vector<8x1xf32> to vector<8x8xf32>
    %75 = arith.subf %71, %74 : vector<8x8xf32>
    %76 = math.exp %75 : vector<8x8xf32>
    %cst_27 = arith.constant dense<0.000000e+00> : vector<8xf32>
    %77 = vector.multi_reduction <add>, %76, %cst_27 [1] : vector<8x8xf32> to vector<8xf32>
    %78 = vector.shape_cast %77 : vector<8xf32> to vector<8x1xf32>
    %79 = tpu.reciprocal %78 {approx = true} : vector<8x1xf32> -> vector<8x1xf32>
    %80 = vector.broadcast %79 : vector<8x1xf32> to vector<8x8xf32>
    %81 = arith.mulf %76, %80 : vector<8x8xf32>
    %82 = arith.truncf %81 : vector<8x8xf32> to vector<8x8xbf16>
    %cst_28 = arith.constant dense<0.000000e+00> : vector<8x32xf32>
    %83 = tpu.matmul %82, %66, %cst_28 {dimension_numbers = #tpu.dot_dimension_numbers<[1], [0], [0], [1], [0, 0, 1, 1], [], []>} : vector<8x8xbf16>, vector<8x32xbf16>, vector<8x32xf32> -> vector<8x32xf32>
    %84 = vector.extract_strided_slice %35 {offsets = [0, 64], sizes = [8, 32], strides = [1, 1]} : vector<8x128xf32> to vector<8x32xf32>
    %85 = arith.truncf %84 : vector<8x32xf32> to vector<8x32xbf16>
    %86 = vector.extract_strided_slice %36 {offsets = [0, 64], sizes = [8, 32], strides = [1, 1]} : vector<8x128xf32> to vector<8x32xf32>
    %87 = arith.truncf %86 : vector<8x32xf32> to vector<8x32xbf16>
    %88 = vector.extract_strided_slice %37 {offsets = [0, 64], sizes = [8, 32], strides = [1, 1]} : vector<8x128xf32> to vector<8x32xf32>
    %89 = arith.truncf %88 : vector<8x32xf32> to vector<8x32xbf16>
    %cst_29 = arith.constant dense<0.000000e+00> : vector<8x8xf32>
    %90 = tpu.matmul %85, %87, %cst_29 {dimension_numbers = #tpu.dot_dimension_numbers<[1], [1], [0], [0], [0, 0, 1, 0], [], []>} : vector<8x32xbf16>, vector<8x32xbf16>, vector<8x8xf32> -> vector<8x8xf32>
    %cst_30 = arith.constant 0.176776692 : f32
    %91 = vector.broadcast %cst_30 : f32 to vector<8x8xf32>
    %92 = arith.mulf %90, %91 : vector<8x8xf32>
    %93 = vector.broadcast %26 : vector<1x8xf32> to vector<8x8xf32>
    %94 = arith.addf %92, %93 : vector<8x8xf32>
    %cst_31 = arith.constant dense<0xFF800000> : vector<8xf32>
    %95 = vector.multi_reduction <maximumf>, %94, %cst_31 [1] : vector<8x8xf32> to vector<8xf32>
    %96 = vector.shape_cast %95 : vector<8xf32> to vector<8x1xf32>
    %97 = vector.broadcast %96 : vector<8x1xf32> to vector<8x8xf32>
    %98 = arith.subf %94, %97 : vector<8x8xf32>
    %99 = math.exp %98 : vector<8x8xf32>
    %cst_32 = arith.constant dense<0.000000e+00> : vector<8xf32>
    %100 = vector.multi_reduction <add>, %99, %cst_32 [1] : vector<8x8xf32> to vector<8xf32>
    %101 = vector.shape_cast %100 : vector<8xf32> to vector<8x1xf32>
    %102 = tpu.reciprocal %101 {approx = true} : vector<8x1xf32> -> vector<8x1xf32>
    %103 = vector.broadcast %102 : vector<8x1xf32> to vector<8x8xf32>
    %104 = arith.mulf %99, %103 : vector<8x8xf32>
    %105 = arith.truncf %104 : vector<8x8xf32> to vector<8x8xbf16>
    %cst_33 = arith.constant dense<0.000000e+00> : vector<8x32xf32>
    %106 = tpu.matmul %105, %89, %cst_33 {dimension_numbers = #tpu.dot_dimension_numbers<[1], [0], [0], [1], [0, 0, 1, 1], [], []>} : vector<8x8xbf16>, vector<8x32xbf16>, vector<8x32xf32> -> vector<8x32xf32>
    %107 = vector.extract_strided_slice %35 {offsets = [0, 96], sizes = [8, 32], strides = [1, 1]} : vector<8x128xf32> to vector<8x32xf32>
    %108 = arith.truncf %107 : vector<8x32xf32> to vector<8x32xbf16>
    %109 = vector.extract_strided_slice %36 {offsets = [0, 96], sizes = [8, 32], strides = [1, 1]} : vector<8x128xf32> to vector<8x32xf32>
    %110 = arith.truncf %109 : vector<8x32xf32> to vector<8x32xbf16>
    %111 = vector.extract_strided_slice %37 {offsets = [0, 96], sizes = [8, 32], strides = [1, 1]} : vector<8x128xf32> to vector<8x32xf32>
    %112 = arith.truncf %111 : vector<8x32xf32> to vector<8x32xbf16>
    %cst_34 = arith.constant dense<0.000000e+00> : vector<8x8xf32>
    %113 = tpu.matmul %108, %110, %cst_34 {dimension_numbers = #tpu.dot_dimension_numbers<[1], [1], [0], [0], [0, 0, 1, 0], [], []>} : vector<8x32xbf16>, vector<8x32xbf16>, vector<8x8xf32> -> vector<8x8xf32>
    %cst_35 = arith.constant 0.176776692 : f32
    %114 = vector.broadcast %cst_35 : f32 to vector<8x8xf32>
    %115 = arith.mulf %113, %114 : vector<8x8xf32>
    %116 = vector.broadcast %26 : vector<1x8xf32> to vector<8x8xf32>
    %117 = arith.addf %115, %116 : vector<8x8xf32>
    %cst_36 = arith.constant dense<0xFF800000> : vector<8xf32>
    %118 = vector.multi_reduction <maximumf>, %117, %cst_36 [1] : vector<8x8xf32> to vector<8xf32>
    %119 = vector.shape_cast %118 : vector<8xf32> to vector<8x1xf32>
    %120 = vector.broadcast %119 : vector<8x1xf32> to vector<8x8xf32>
    %121 = arith.subf %117, %120 : vector<8x8xf32>
    %122 = math.exp %121 : vector<8x8xf32>
    %cst_37 = arith.constant dense<0.000000e+00> : vector<8xf32>
    %123 = vector.multi_reduction <add>, %122, %cst_37 [1] : vector<8x8xf32> to vector<8xf32>
    %124 = vector.shape_cast %123 : vector<8xf32> to vector<8x1xf32>
    %125 = tpu.reciprocal %124 {approx = true} : vector<8x1xf32> -> vector<8x1xf32>
    %126 = vector.broadcast %125 : vector<8x1xf32> to vector<8x8xf32>
    %127 = arith.mulf %122, %126 : vector<8x8xf32>
    %128 = arith.truncf %127 : vector<8x8xf32> to vector<8x8xbf16>
    %cst_38 = arith.constant dense<0.000000e+00> : vector<8x32xf32>
    %129 = tpu.matmul %128, %112, %cst_38 {dimension_numbers = #tpu.dot_dimension_numbers<[1], [0], [0], [1], [0, 0, 1, 1], [], []>} : vector<8x8xbf16>, vector<8x32xbf16>, vector<8x32xf32> -> vector<8x32xf32>
    %130 = tpu.concatenate %60, %83, %106, %129 in 1 : vector<8x32xf32>, vector<8x32xf32>, vector<8x32xf32>, vector<8x32xf32> -> vector<8x128xf32>
    %131 = arith.truncf %130 : vector<8x128xf32> to vector<8x128xbf16>
    %c0_39 = arith.constant 0 : index
    %c0_40 = arith.constant 0 : index
    %c0_41 = arith.constant 0 : index
    %132 = vector.load %arg7[%c0_39, %c0_40, %c0_41] : memref<2x128x128xbf16, #tpu.memory_space<vmem>>, vector<1x128x128xbf16>
    %133 = vector.shape_cast %132 : vector<1x128x128xbf16> to vector<128x128xbf16>
    %cst_42 = arith.constant dense<0.000000e+00> : vector<8x128xf32>
    %134 = tpu.matmul %131, %133, %cst_42 {dimension_numbers = #tpu.dot_dimension_numbers<[1], [0], [0], [1], [0, 0, 1, 1], [], []>} : vector<8x128xbf16>, vector<128x128xbf16>, vector<8x128xf32> -> vector<8x128xf32>
    %c0_43 = arith.constant 0 : index
    %c0_44 = arith.constant 0 : index
    %c0_45 = arith.constant 0 : index
    %135 = vector.load %arg8[%c0_43, %c0_44, %c0_45] : memref<2x1x128xf32, #tpu.memory_space<vmem>>, vector<1x1x128xf32>
    %136 = vector.shape_cast %135 : vector<1x1x128xf32> to vector<1x128xf32>
    %137 = vector.broadcast %136 : vector<1x128xf32> to vector<8x128xf32>
    %138 = arith.addf %134, %137 : vector<8x128xf32>
    %139 = arith.addf %138, %24 : vector<8x128xf32>
    %c0_46 = arith.constant 0 : index
    %c0_47 = arith.constant 0 : index
    %c0_48 = arith.constant 0 : index
    %140 = vector.load %arg9[%c0_46, %c0_47, %c0_48] : memref<2x1x128xf32, #tpu.memory_space<vmem>>, vector<1x1x128xf32>
    %141 = vector.shape_cast %140 : vector<1x1x128xf32> to vector<1x128xf32>
    %c0_49 = arith.constant 0 : index
    %c0_50 = arith.constant 0 : index
    %c0_51 = arith.constant 0 : index
    %142 = vector.load %arg10[%c0_49, %c0_50, %c0_51] : memref<2x1x128xf32, #tpu.memory_space<vmem>>, vector<1x1x128xf32>
    %143 = vector.shape_cast %142 : vector<1x1x128xf32> to vector<1x128xf32>
    %cst_52 = arith.constant dense<0.000000e+00> : vector<8xf32>
    %144 = vector.multi_reduction <add>, %139, %cst_52 [1] : vector<8x128xf32> to vector<8xf32>
    %145 = vector.shape_cast %144 : vector<8xf32> to vector<8x1xf32>
    %cst_53 = arith.constant 1.280000e+02 : f32
    %146 = vector.broadcast %cst_53 : f32 to vector<8x1xf32>
    %147 = arith.divf %145, %146 : vector<8x1xf32>
    %148 = vector.broadcast %147 : vector<8x1xf32> to vector<8x128xf32>
    %149 = arith.subf %139, %148 : vector<8x128xf32>
    %150 = arith.mulf %149, %149 : vector<8x128xf32>
    %cst_54 = arith.constant dense<0.000000e+00> : vector<8xf32>
    %151 = vector.multi_reduction <add>, %150, %cst_54 [1] : vector<8x128xf32> to vector<8xf32>
    %152 = vector.shape_cast %151 : vector<8xf32> to vector<8x1xf32>
    %cst_55 = arith.constant 1.280000e+02 : f32
    %153 = vector.broadcast %cst_55 : f32 to vector<8x1xf32>
    %154 = arith.divf %152, %153 : vector<8x1xf32>
    %155 = vector.broadcast %147 : vector<8x1xf32> to vector<8x128xf32>
    %156 = arith.subf %139, %155 : vector<8x128xf32>
    %cst_56 = arith.constant 9.99999974E-6 : f32
    %157 = vector.broadcast %cst_56 : f32 to vector<8x1xf32>
    %158 = arith.addf %154, %157 : vector<8x1xf32>
    %159 = math.rsqrt %158 : vector<8x1xf32>
    %160 = vector.broadcast %159 : vector<8x1xf32> to vector<8x128xf32>
    %161 = arith.mulf %156, %160 : vector<8x128xf32>
    %162 = vector.broadcast %141 : vector<1x128xf32> to vector<8x128xf32>
    %163 = arith.mulf %161, %162 : vector<8x128xf32>
    %164 = vector.broadcast %143 : vector<1x128xf32> to vector<8x128xf32>
    %165 = arith.addf %163, %164 : vector<8x128xf32>
    %166 = arith.truncf %165 : vector<8x128xf32> to vector<8x128xbf16>
    %c0_57 = arith.constant 0 : index
    %c0_58 = arith.constant 0 : index
    %c0_59 = arith.constant 0 : index
    %167 = vector.load %arg11[%c0_57, %c0_58, %c0_59] : memref<2x128x256xbf16, #tpu.memory_space<vmem>>, vector<1x128x256xbf16>
    %168 = vector.shape_cast %167 : vector<1x128x256xbf16> to vector<128x256xbf16>
    %cst_60 = arith.constant dense<0.000000e+00> : vector<8x256xf32>
    %169 = tpu.matmul %166, %168, %cst_60 {dimension_numbers = #tpu.dot_dimension_numbers<[1], [0], [0], [1], [0, 0, 1, 1], [], []>} : vector<8x128xbf16>, vector<128x256xbf16>, vector<8x256xf32> -> vector<8x256xf32>
    %c0_61 = arith.constant 0 : index
    %c0_62 = arith.constant 0 : index
    %c0_63 = arith.constant 0 : index
    %170 = vector.load %arg12[%c0_61, %c0_62, %c0_63] : memref<2x1x256xf32, #tpu.memory_space<vmem>>, vector<1x1x256xf32>
    %171 = vector.shape_cast %170 : vector<1x1x256xf32> to vector<1x256xf32>
    %172 = vector.broadcast %171 : vector<1x256xf32> to vector<8x256xf32>
    %173 = arith.addf %169, %172 : vector<8x256xf32>
    %cst_64 = arith.constant 5.000000e-01 : f32
    %174 = vector.broadcast %cst_64 : f32 to vector<8x256xf32>
    %175 = arith.mulf %174, %173 : vector<8x256xf32>
    %cst_65 = arith.constant 4.471500e-02 : f32
    %176 = vector.broadcast %cst_65 : f32 to vector<8x256xf32>
    %177 = arith.mulf %176, %173 : vector<8x256xf32>
    %178 = arith.mulf %177, %173 : vector<8x256xf32>
    %179 = arith.mulf %178, %173 : vector<8x256xf32>
    %180 = arith.addf %173, %179 : vector<8x256xf32>
    %cst_66 = arith.constant 0.797884583 : f32
    %181 = vector.broadcast %cst_66 : f32 to vector<8x256xf32>
    %182 = arith.mulf %181, %180 : vector<8x256xf32>
    %183 = math.tanh %182 : vector<8x256xf32>
    %cst_67 = arith.constant 1.000000e+00 : f32
    %184 = vector.broadcast %cst_67 : f32 to vector<8x256xf32>
    %185 = arith.addf %184, %183 : vector<8x256xf32>
    %186 = arith.mulf %175, %185 : vector<8x256xf32>
    %187 = arith.truncf %186 : vector<8x256xf32> to vector<8x256xbf16>
    %c0_68 = arith.constant 0 : index
    %c0_69 = arith.constant 0 : index
    %c0_70 = arith.constant 0 : index
    %188 = vector.load %arg13[%c0_68, %c0_69, %c0_70] : memref<2x256x128xbf16, #tpu.memory_space<vmem>>, vector<1x256x128xbf16>
    %189 = vector.shape_cast %188 : vector<1x256x128xbf16> to vector<256x128xbf16>
    %cst_71 = arith.constant dense<0.000000e+00> : vector<8x128xf32>
    %190 = tpu.matmul %187, %189, %cst_71 {dimension_numbers = #tpu.dot_dimension_numbers<[1], [0], [0], [1], [0, 0, 1, 1], [], []>} : vector<8x256xbf16>, vector<256x128xbf16>, vector<8x128xf32> -> vector<8x128xf32>
    %c0_72 = arith.constant 0 : index
    %c0_73 = arith.constant 0 : index
    %c0_74 = arith.constant 0 : index
    %191 = vector.load %arg14[%c0_72, %c0_73, %c0_74] : memref<2x1x128xf32, #tpu.memory_space<vmem>>, vector<1x1x128xf32>
    %192 = vector.shape_cast %191 : vector<1x1x128xf32> to vector<1x128xf32>
    %193 = vector.broadcast %192 : vector<1x128xf32> to vector<8x128xf32>
    %194 = arith.addf %190, %193 : vector<8x128xf32>
    %195 = arith.addf %194, %165 : vector<8x128xf32>
    %c0_75 = arith.constant 0 : index
    %c0_76 = arith.constant 0 : index
    %c0_77 = arith.constant 0 : index
    %196 = vector.load %arg15[%c0_75, %c0_76, %c0_77] : memref<2x1x128xf32, #tpu.memory_space<vmem>>, vector<1x1x128xf32>
    %197 = vector.shape_cast %196 : vector<1x1x128xf32> to vector<1x128xf32>
    %c0_78 = arith.constant 0 : index
    %c0_79 = arith.constant 0 : index
    %c0_80 = arith.constant 0 : index
    %198 = vector.load %arg16[%c0_78, %c0_79, %c0_80] : memref<2x1x128xf32, #tpu.memory_space<vmem>>, vector<1x1x128xf32>
    %199 = vector.shape_cast %198 : vector<1x1x128xf32> to vector<1x128xf32>
    %cst_81 = arith.constant dense<0.000000e+00> : vector<8xf32>
    %200 = vector.multi_reduction <add>, %195, %cst_81 [1] : vector<8x128xf32> to vector<8xf32>
    %201 = vector.shape_cast %200 : vector<8xf32> to vector<8x1xf32>
    %cst_82 = arith.constant 1.280000e+02 : f32
    %202 = vector.broadcast %cst_82 : f32 to vector<8x1xf32>
    %203 = arith.divf %201, %202 : vector<8x1xf32>
    %204 = vector.broadcast %203 : vector<8x1xf32> to vector<8x128xf32>
    %205 = arith.subf %195, %204 : vector<8x128xf32>
    %206 = arith.mulf %205, %205 : vector<8x128xf32>
    %cst_83 = arith.constant dense<0.000000e+00> : vector<8xf32>
    %207 = vector.multi_reduction <add>, %206, %cst_83 [1] : vector<8x128xf32> to vector<8xf32>
    %208 = vector.shape_cast %207 : vector<8xf32> to vector<8x1xf32>
    %cst_84 = arith.constant 1.280000e+02 : f32
    %209 = vector.broadcast %cst_84 : f32 to vector<8x1xf32>
    %210 = arith.divf %208, %209 : vector<8x1xf32>
    %211 = vector.broadcast %203 : vector<8x1xf32> to vector<8x128xf32>
    %212 = arith.subf %195, %211 : vector<8x128xf32>
    %cst_85 = arith.constant 9.99999974E-6 : f32
    %213 = vector.broadcast %cst_85 : f32 to vector<8x1xf32>
    %214 = arith.addf %210, %213 : vector<8x1xf32>
    %215 = math.rsqrt %214 : vector<8x1xf32>
    %216 = vector.broadcast %215 : vector<8x1xf32> to vector<8x128xf32>
    %217 = arith.mulf %212, %216 : vector<8x128xf32>
    %218 = vector.broadcast %197 : vector<1x128xf32> to vector<8x128xf32>
    %219 = arith.mulf %217, %218 : vector<8x128xf32>
    %220 = vector.broadcast %199 : vector<1x128xf32> to vector<8x128xf32>
    %221 = arith.addf %219, %220 : vector<8x128xf32>
    %222 = arith.truncf %221 : vector<8x128xf32> to vector<8x128xbf16>
    %c1 = arith.constant 1 : index
    %c0_86 = arith.constant 0 : index
    %c0_87 = arith.constant 0 : index
    %223 = vector.load %arg5[%c1, %c0_86, %c0_87] : memref<2x128x384xbf16, #tpu.memory_space<vmem>>, vector<1x128x384xbf16>
    %224 = vector.shape_cast %223 : vector<1x128x384xbf16> to vector<128x384xbf16>
    %cst_88 = arith.constant dense<0.000000e+00> : vector<8x384xf32>
    %225 = tpu.matmul %222, %224, %cst_88 {dimension_numbers = #tpu.dot_dimension_numbers<[1], [0], [0], [1], [0, 0, 1, 1], [], []>} : vector<8x128xbf16>, vector<128x384xbf16>, vector<8x384xf32> -> vector<8x384xf32>
    %c1_89 = arith.constant 1 : index
    %c0_90 = arith.constant 0 : index
    %c0_91 = arith.constant 0 : index
    %226 = vector.load %arg6[%c1_89, %c0_90, %c0_91] : memref<2x1x384xf32, #tpu.memory_space<vmem>>, vector<1x1x384xf32>
    %227 = vector.shape_cast %226 : vector<1x1x384xf32> to vector<1x384xf32>
    %228 = vector.broadcast %227 : vector<1x384xf32> to vector<8x384xf32>
    %229 = arith.addf %225, %228 : vector<8x384xf32>
    %230 = vector.extract_strided_slice %229 {offsets = [0, 0], sizes = [8, 128], strides = [1, 1]} : vector<8x384xf32> to vector<8x128xf32>
    %231 = vector.extract_strided_slice %229 {offsets = [0, 128], sizes = [8, 128], strides = [1, 1]} : vector<8x384xf32> to vector<8x128xf32>
    %232 = vector.extract_strided_slice %229 {offsets = [0, 256], sizes = [8, 128], strides = [1, 1]} : vector<8x384xf32> to vector<8x128xf32>
    %233 = vector.extract_strided_slice %230 {offsets = [0, 0], sizes = [8, 32], strides = [1, 1]} : vector<8x128xf32> to vector<8x32xf32>
    %234 = arith.truncf %233 : vector<8x32xf32> to vector<8x32xbf16>
    %235 = vector.extract_strided_slice %231 {offsets = [0, 0], sizes = [8, 32], strides = [1, 1]} : vector<8x128xf32> to vector<8x32xf32>
    %236 = arith.truncf %235 : vector<8x32xf32> to vector<8x32xbf16>
    %237 = vector.extract_strided_slice %232 {offsets = [0, 0], sizes = [8, 32], strides = [1, 1]} : vector<8x128xf32> to vector<8x32xf32>
    %238 = arith.truncf %237 : vector<8x32xf32> to vector<8x32xbf16>
    %cst_92 = arith.constant dense<0.000000e+00> : vector<8x8xf32>
    %239 = tpu.matmul %234, %236, %cst_92 {dimension_numbers = #tpu.dot_dimension_numbers<[1], [1], [0], [0], [0, 0, 1, 0], [], []>} : vector<8x32xbf16>, vector<8x32xbf16>, vector<8x8xf32> -> vector<8x8xf32>
    %cst_93 = arith.constant 0.176776692 : f32
    %240 = vector.broadcast %cst_93 : f32 to vector<8x8xf32>
    %241 = arith.mulf %239, %240 : vector<8x8xf32>
    %242 = vector.broadcast %26 : vector<1x8xf32> to vector<8x8xf32>
    %243 = arith.addf %241, %242 : vector<8x8xf32>
    %cst_94 = arith.constant dense<0xFF800000> : vector<8xf32>
    %244 = vector.multi_reduction <maximumf>, %243, %cst_94 [1] : vector<8x8xf32> to vector<8xf32>
    %245 = vector.shape_cast %244 : vector<8xf32> to vector<8x1xf32>
    %246 = vector.broadcast %245 : vector<8x1xf32> to vector<8x8xf32>
    %247 = arith.subf %243, %246 : vector<8x8xf32>
    %248 = math.exp %247 : vector<8x8xf32>
    %cst_95 = arith.constant dense<0.000000e+00> : vector<8xf32>
    %249 = vector.multi_reduction <add>, %248, %cst_95 [1] : vector<8x8xf32> to vector<8xf32>
    %250 = vector.shape_cast %249 : vector<8xf32> to vector<8x1xf32>
    %251 = tpu.reciprocal %250 {approx = true} : vector<8x1xf32> -> vector<8x1xf32>
    %252 = vector.broadcast %251 : vector<8x1xf32> to vector<8x8xf32>
    %253 = arith.mulf %248, %252 : vector<8x8xf32>
    %254 = arith.truncf %253 : vector<8x8xf32> to vector<8x8xbf16>
    %cst_96 = arith.constant dense<0.000000e+00> : vector<8x32xf32>
    %255 = tpu.matmul %254, %238, %cst_96 {dimension_numbers = #tpu.dot_dimension_numbers<[1], [0], [0], [1], [0, 0, 1, 1], [], []>} : vector<8x8xbf16>, vector<8x32xbf16>, vector<8x32xf32> -> vector<8x32xf32>
    %256 = vector.extract_strided_slice %230 {offsets = [0, 32], sizes = [8, 32], strides = [1, 1]} : vector<8x128xf32> to vector<8x32xf32>
    %257 = arith.truncf %256 : vector<8x32xf32> to vector<8x32xbf16>
    %258 = vector.extract_strided_slice %231 {offsets = [0, 32], sizes = [8, 32], strides = [1, 1]} : vector<8x128xf32> to vector<8x32xf32>
    %259 = arith.truncf %258 : vector<8x32xf32> to vector<8x32xbf16>
    %260 = vector.extract_strided_slice %232 {offsets = [0, 32], sizes = [8, 32], strides = [1, 1]} : vector<8x128xf32> to vector<8x32xf32>
    %261 = arith.truncf %260 : vector<8x32xf32> to vector<8x32xbf16>
    %cst_97 = arith.constant dense<0.000000e+00> : vector<8x8xf32>
    %262 = tpu.matmul %257, %259, %cst_97 {dimension_numbers = #tpu.dot_dimension_numbers<[1], [1], [0], [0], [0, 0, 1, 0], [], []>} : vector<8x32xbf16>, vector<8x32xbf16>, vector<8x8xf32> -> vector<8x8xf32>
    %cst_98 = arith.constant 0.176776692 : f32
    %263 = vector.broadcast %cst_98 : f32 to vector<8x8xf32>
    %264 = arith.mulf %262, %263 : vector<8x8xf32>
    %265 = vector.broadcast %26 : vector<1x8xf32> to vector<8x8xf32>
    %266 = arith.addf %264, %265 : vector<8x8xf32>
    %cst_99 = arith.constant dense<0xFF800000> : vector<8xf32>
    %267 = vector.multi_reduction <maximumf>, %266, %cst_99 [1] : vector<8x8xf32> to vector<8xf32>
    %268 = vector.shape_cast %267 : vector<8xf32> to vector<8x1xf32>
    %269 = vector.broadcast %268 : vector<8x1xf32> to vector<8x8xf32>
    %270 = arith.subf %266, %269 : vector<8x8xf32>
    %271 = math.exp %270 : vector<8x8xf32>
    %cst_100 = arith.constant dense<0.000000e+00> : vector<8xf32>
    %272 = vector.multi_reduction <add>, %271, %cst_100 [1] : vector<8x8xf32> to vector<8xf32>
    %273 = vector.shape_cast %272 : vector<8xf32> to vector<8x1xf32>
    %274 = tpu.reciprocal %273 {approx = true} : vector<8x1xf32> -> vector<8x1xf32>
    %275 = vector.broadcast %274 : vector<8x1xf32> to vector<8x8xf32>
    %276 = arith.mulf %271, %275 : vector<8x8xf32>
    %277 = arith.truncf %276 : vector<8x8xf32> to vector<8x8xbf16>
    %cst_101 = arith.constant dense<0.000000e+00> : vector<8x32xf32>
    %278 = tpu.matmul %277, %261, %cst_101 {dimension_numbers = #tpu.dot_dimension_numbers<[1], [0], [0], [1], [0, 0, 1, 1], [], []>} : vector<8x8xbf16>, vector<8x32xbf16>, vector<8x32xf32> -> vector<8x32xf32>
    %279 = vector.extract_strided_slice %230 {offsets = [0, 64], sizes = [8, 32], strides = [1, 1]} : vector<8x128xf32> to vector<8x32xf32>
    %280 = arith.truncf %279 : vector<8x32xf32> to vector<8x32xbf16>
    %281 = vector.extract_strided_slice %231 {offsets = [0, 64], sizes = [8, 32], strides = [1, 1]} : vector<8x128xf32> to vector<8x32xf32>
    %282 = arith.truncf %281 : vector<8x32xf32> to vector<8x32xbf16>
    %283 = vector.extract_strided_slice %232 {offsets = [0, 64], sizes = [8, 32], strides = [1, 1]} : vector<8x128xf32> to vector<8x32xf32>
    %284 = arith.truncf %283 : vector<8x32xf32> to vector<8x32xbf16>
    %cst_102 = arith.constant dense<0.000000e+00> : vector<8x8xf32>
    %285 = tpu.matmul %280, %282, %cst_102 {dimension_numbers = #tpu.dot_dimension_numbers<[1], [1], [0], [0], [0, 0, 1, 0], [], []>} : vector<8x32xbf16>, vector<8x32xbf16>, vector<8x8xf32> -> vector<8x8xf32>
    %cst_103 = arith.constant 0.176776692 : f32
    %286 = vector.broadcast %cst_103 : f32 to vector<8x8xf32>
    %287 = arith.mulf %285, %286 : vector<8x8xf32>
    %288 = vector.broadcast %26 : vector<1x8xf32> to vector<8x8xf32>
    %289 = arith.addf %287, %288 : vector<8x8xf32>
    %cst_104 = arith.constant dense<0xFF800000> : vector<8xf32>
    %290 = vector.multi_reduction <maximumf>, %289, %cst_104 [1] : vector<8x8xf32> to vector<8xf32>
    %291 = vector.shape_cast %290 : vector<8xf32> to vector<8x1xf32>
    %292 = vector.broadcast %291 : vector<8x1xf32> to vector<8x8xf32>
    %293 = arith.subf %289, %292 : vector<8x8xf32>
    %294 = math.exp %293 : vector<8x8xf32>
    %cst_105 = arith.constant dense<0.000000e+00> : vector<8xf32>
    %295 = vector.multi_reduction <add>, %294, %cst_105 [1] : vector<8x8xf32> to vector<8xf32>
    %296 = vector.shape_cast %295 : vector<8xf32> to vector<8x1xf32>
    %297 = tpu.reciprocal %296 {approx = true} : vector<8x1xf32> -> vector<8x1xf32>
    %298 = vector.broadcast %297 : vector<8x1xf32> to vector<8x8xf32>
    %299 = arith.mulf %294, %298 : vector<8x8xf32>
    %300 = arith.truncf %299 : vector<8x8xf32> to vector<8x8xbf16>
    %cst_106 = arith.constant dense<0.000000e+00> : vector<8x32xf32>
    %301 = tpu.matmul %300, %284, %cst_106 {dimension_numbers = #tpu.dot_dimension_numbers<[1], [0], [0], [1], [0, 0, 1, 1], [], []>} : vector<8x8xbf16>, vector<8x32xbf16>, vector<8x32xf32> -> vector<8x32xf32>
    %302 = vector.extract_strided_slice %230 {offsets = [0, 96], sizes = [8, 32], strides = [1, 1]} : vector<8x128xf32> to vector<8x32xf32>
    %303 = arith.truncf %302 : vector<8x32xf32> to vector<8x32xbf16>
    %304 = vector.extract_strided_slice %231 {offsets = [0, 96], sizes = [8, 32], strides = [1, 1]} : vector<8x128xf32> to vector<8x32xf32>
    %305 = arith.truncf %304 : vector<8x32xf32> to vector<8x32xbf16>
    %306 = vector.extract_strided_slice %232 {offsets = [0, 96], sizes = [8, 32], strides = [1, 1]} : vector<8x128xf32> to vector<8x32xf32>
    %307 = arith.truncf %306 : vector<8x32xf32> to vector<8x32xbf16>
    %cst_107 = arith.constant dense<0.000000e+00> : vector<8x8xf32>
    %308 = tpu.matmul %303, %305, %cst_107 {dimension_numbers = #tpu.dot_dimension_numbers<[1], [1], [0], [0], [0, 0, 1, 0], [], []>} : vector<8x32xbf16>, vector<8x32xbf16>, vector<8x8xf32> -> vector<8x8xf32>
    %cst_108 = arith.constant 0.176776692 : f32
    %309 = vector.broadcast %cst_108 : f32 to vector<8x8xf32>
    %310 = arith.mulf %308, %309 : vector<8x8xf32>
    %311 = vector.broadcast %26 : vector<1x8xf32> to vector<8x8xf32>
    %312 = arith.addf %310, %311 : vector<8x8xf32>
    %cst_109 = arith.constant dense<0xFF800000> : vector<8xf32>
    %313 = vector.multi_reduction <maximumf>, %312, %cst_109 [1] : vector<8x8xf32> to vector<8xf32>
    %314 = vector.shape_cast %313 : vector<8xf32> to vector<8x1xf32>
    %315 = vector.broadcast %314 : vector<8x1xf32> to vector<8x8xf32>
    %316 = arith.subf %312, %315 : vector<8x8xf32>
    %317 = math.exp %316 : vector<8x8xf32>
    %cst_110 = arith.constant dense<0.000000e+00> : vector<8xf32>
    %318 = vector.multi_reduction <add>, %317, %cst_110 [1] : vector<8x8xf32> to vector<8xf32>
    %319 = vector.shape_cast %318 : vector<8xf32> to vector<8x1xf32>
    %320 = tpu.reciprocal %319 {approx = true} : vector<8x1xf32> -> vector<8x1xf32>
    %321 = vector.broadcast %320 : vector<8x1xf32> to vector<8x8xf32>
    %322 = arith.mulf %317, %321 : vector<8x8xf32>
    %323 = arith.truncf %322 : vector<8x8xf32> to vector<8x8xbf16>
    %cst_111 = arith.constant dense<0.000000e+00> : vector<8x32xf32>
    %324 = tpu.matmul %323, %307, %cst_111 {dimension_numbers = #tpu.dot_dimension_numbers<[1], [0], [0], [1], [0, 0, 1, 1], [], []>} : vector<8x8xbf16>, vector<8x32xbf16>, vector<8x32xf32> -> vector<8x32xf32>
    %325 = tpu.concatenate %255, %278, %301, %324 in 1 : vector<8x32xf32>, vector<8x32xf32>, vector<8x32xf32>, vector<8x32xf32> -> vector<8x128xf32>
    %326 = arith.truncf %325 : vector<8x128xf32> to vector<8x128xbf16>
    %c1_112 = arith.constant 1 : index
    %c0_113 = arith.constant 0 : index
    %c0_114 = arith.constant 0 : index
    %327 = vector.load %arg7[%c1_112, %c0_113, %c0_114] : memref<2x128x128xbf16, #tpu.memory_space<vmem>>, vector<1x128x128xbf16>
    %328 = vector.shape_cast %327 : vector<1x128x128xbf16> to vector<128x128xbf16>
    %cst_115 = arith.constant dense<0.000000e+00> : vector<8x128xf32>
    %329 = tpu.matmul %326, %328, %cst_115 {dimension_numbers = #tpu.dot_dimension_numbers<[1], [0], [0], [1], [0, 0, 1, 1], [], []>} : vector<8x128xbf16>, vector<128x128xbf16>, vector<8x128xf32> -> vector<8x128xf32>
    %c1_116 = arith.constant 1 : index
    %c0_117 = arith.constant 0 : index
    %c0_118 = arith.constant 0 : index
    %330 = vector.load %arg8[%c1_116, %c0_117, %c0_118] : memref<2x1x128xf32, #tpu.memory_space<vmem>>, vector<1x1x128xf32>
    %331 = vector.shape_cast %330 : vector<1x1x128xf32> to vector<1x128xf32>
    %332 = vector.broadcast %331 : vector<1x128xf32> to vector<8x128xf32>
    %333 = arith.addf %329, %332 : vector<8x128xf32>
    %334 = arith.addf %333, %221 : vector<8x128xf32>
    %c1_119 = arith.constant 1 : index
    %c0_120 = arith.constant 0 : index
    %c0_121 = arith.constant 0 : index
    %335 = vector.load %arg9[%c1_119, %c0_120, %c0_121] : memref<2x1x128xf32, #tpu.memory_space<vmem>>, vector<1x1x128xf32>
    %336 = vector.shape_cast %335 : vector<1x1x128xf32> to vector<1x128xf32>
    %c1_122 = arith.constant 1 : index
    %c0_123 = arith.constant 0 : index
    %c0_124 = arith.constant 0 : index
    %337 = vector.load %arg10[%c1_122, %c0_123, %c0_124] : memref<2x1x128xf32, #tpu.memory_space<vmem>>, vector<1x1x128xf32>
    %338 = vector.shape_cast %337 : vector<1x1x128xf32> to vector<1x128xf32>
    %cst_125 = arith.constant dense<0.000000e+00> : vector<8xf32>
    %339 = vector.multi_reduction <add>, %334, %cst_125 [1] : vector<8x128xf32> to vector<8xf32>
    %340 = vector.shape_cast %339 : vector<8xf32> to vector<8x1xf32>
    %cst_126 = arith.constant 1.280000e+02 : f32
    %341 = vector.broadcast %cst_126 : f32 to vector<8x1xf32>
    %342 = arith.divf %340, %341 : vector<8x1xf32>
    %343 = vector.broadcast %342 : vector<8x1xf32> to vector<8x128xf32>
    %344 = arith.subf %334, %343 : vector<8x128xf32>
    %345 = arith.mulf %344, %344 : vector<8x128xf32>
    %cst_127 = arith.constant dense<0.000000e+00> : vector<8xf32>
    %346 = vector.multi_reduction <add>, %345, %cst_127 [1] : vector<8x128xf32> to vector<8xf32>
    %347 = vector.shape_cast %346 : vector<8xf32> to vector<8x1xf32>
    %cst_128 = arith.constant 1.280000e+02 : f32
    %348 = vector.broadcast %cst_128 : f32 to vector<8x1xf32>
    %349 = arith.divf %347, %348 : vector<8x1xf32>
    %350 = vector.broadcast %342 : vector<8x1xf32> to vector<8x128xf32>
    %351 = arith.subf %334, %350 : vector<8x128xf32>
    %cst_129 = arith.constant 9.99999974E-6 : f32
    %352 = vector.broadcast %cst_129 : f32 to vector<8x1xf32>
    %353 = arith.addf %349, %352 : vector<8x1xf32>
    %354 = math.rsqrt %353 : vector<8x1xf32>
    %355 = vector.broadcast %354 : vector<8x1xf32> to vector<8x128xf32>
    %356 = arith.mulf %351, %355 : vector<8x128xf32>
    %357 = vector.broadcast %336 : vector<1x128xf32> to vector<8x128xf32>
    %358 = arith.mulf %356, %357 : vector<8x128xf32>
    %359 = vector.broadcast %338 : vector<1x128xf32> to vector<8x128xf32>
    %360 = arith.addf %358, %359 : vector<8x128xf32>
    %361 = arith.truncf %360 : vector<8x128xf32> to vector<8x128xbf16>
    %c1_130 = arith.constant 1 : index
    %c0_131 = arith.constant 0 : index
    %c0_132 = arith.constant 0 : index
    %362 = vector.load %arg11[%c1_130, %c0_131, %c0_132] : memref<2x128x256xbf16, #tpu.memory_space<vmem>>, vector<1x128x256xbf16>
    %363 = vector.shape_cast %362 : vector<1x128x256xbf16> to vector<128x256xbf16>
    %cst_133 = arith.constant dense<0.000000e+00> : vector<8x256xf32>
    %364 = tpu.matmul %361, %363, %cst_133 {dimension_numbers = #tpu.dot_dimension_numbers<[1], [0], [0], [1], [0, 0, 1, 1], [], []>} : vector<8x128xbf16>, vector<128x256xbf16>, vector<8x256xf32> -> vector<8x256xf32>
    %c1_134 = arith.constant 1 : index
    %c0_135 = arith.constant 0 : index
    %c0_136 = arith.constant 0 : index
    %365 = vector.load %arg12[%c1_134, %c0_135, %c0_136] : memref<2x1x256xf32, #tpu.memory_space<vmem>>, vector<1x1x256xf32>
    %366 = vector.shape_cast %365 : vector<1x1x256xf32> to vector<1x256xf32>
    %367 = vector.broadcast %366 : vector<1x256xf32> to vector<8x256xf32>
    %368 = arith.addf %364, %367 : vector<8x256xf32>
    %cst_137 = arith.constant 5.000000e-01 : f32
    %369 = vector.broadcast %cst_137 : f32 to vector<8x256xf32>
    %370 = arith.mulf %369, %368 : vector<8x256xf32>
    %cst_138 = arith.constant 4.471500e-02 : f32
    %371 = vector.broadcast %cst_138 : f32 to vector<8x256xf32>
    %372 = arith.mulf %371, %368 : vector<8x256xf32>
    %373 = arith.mulf %372, %368 : vector<8x256xf32>
    %374 = arith.mulf %373, %368 : vector<8x256xf32>
    %375 = arith.addf %368, %374 : vector<8x256xf32>
    %cst_139 = arith.constant 0.797884583 : f32
    %376 = vector.broadcast %cst_139 : f32 to vector<8x256xf32>
    %377 = arith.mulf %376, %375 : vector<8x256xf32>
    %378 = math.tanh %377 : vector<8x256xf32>
    %cst_140 = arith.constant 1.000000e+00 : f32
    %379 = vector.broadcast %cst_140 : f32 to vector<8x256xf32>
    %380 = arith.addf %379, %378 : vector<8x256xf32>
    %381 = arith.mulf %370, %380 : vector<8x256xf32>
    %382 = arith.truncf %381 : vector<8x256xf32> to vector<8x256xbf16>
    %c1_141 = arith.constant 1 : index
    %c0_142 = arith.constant 0 : index
    %c0_143 = arith.constant 0 : index
    %383 = vector.load %arg13[%c1_141, %c0_142, %c0_143] : memref<2x256x128xbf16, #tpu.memory_space<vmem>>, vector<1x256x128xbf16>
    %384 = vector.shape_cast %383 : vector<1x256x128xbf16> to vector<256x128xbf16>
    %cst_144 = arith.constant dense<0.000000e+00> : vector<8x128xf32>
    %385 = tpu.matmul %382, %384, %cst_144 {dimension_numbers = #tpu.dot_dimension_numbers<[1], [0], [0], [1], [0, 0, 1, 1], [], []>} : vector<8x256xbf16>, vector<256x128xbf16>, vector<8x128xf32> -> vector<8x128xf32>
    %c1_145 = arith.constant 1 : index
    %c0_146 = arith.constant 0 : index
    %c0_147 = arith.constant 0 : index
    %386 = vector.load %arg14[%c1_145, %c0_146, %c0_147] : memref<2x1x128xf32, #tpu.memory_space<vmem>>, vector<1x1x128xf32>
    %387 = vector.shape_cast %386 : vector<1x1x128xf32> to vector<1x128xf32>
    %388 = vector.broadcast %387 : vector<1x128xf32> to vector<8x128xf32>
    %389 = arith.addf %385, %388 : vector<8x128xf32>
    %390 = arith.addf %389, %360 : vector<8x128xf32>
    %c1_148 = arith.constant 1 : index
    %c0_149 = arith.constant 0 : index
    %c0_150 = arith.constant 0 : index
    %391 = vector.load %arg15[%c1_148, %c0_149, %c0_150] : memref<2x1x128xf32, #tpu.memory_space<vmem>>, vector<1x1x128xf32>
    %392 = vector.shape_cast %391 : vector<1x1x128xf32> to vector<1x128xf32>
    %c1_151 = arith.constant 1 : index
    %c0_152 = arith.constant 0 : index
    %c0_153 = arith.constant 0 : index
    %393 = vector.load %arg16[%c1_151, %c0_152, %c0_153] : memref<2x1x128xf32, #tpu.memory_space<vmem>>, vector<1x1x128xf32>
    %394 = vector.shape_cast %393 : vector<1x1x128xf32> to vector<1x128xf32>
    %cst_154 = arith.constant dense<0.000000e+00> : vector<8xf32>
    %395 = vector.multi_reduction <add>, %390, %cst_154 [1] : vector<8x128xf32> to vector<8xf32>
    %396 = vector.shape_cast %395 : vector<8xf32> to vector<8x1xf32>
    %cst_155 = arith.constant 1.280000e+02 : f32
    %397 = vector.broadcast %cst_155 : f32 to vector<8x1xf32>
    %398 = arith.divf %396, %397 : vector<8x1xf32>
    %399 = vector.broadcast %398 : vector<8x1xf32> to vector<8x128xf32>
    %400 = arith.subf %390, %399 : vector<8x128xf32>
    %401 = arith.mulf %400, %400 : vector<8x128xf32>
    %cst_156 = arith.constant dense<0.000000e+00> : vector<8xf32>
    %402 = vector.multi_reduction <add>, %401, %cst_156 [1] : vector<8x128xf32> to vector<8xf32>
    %403 = vector.shape_cast %402 : vector<8xf32> to vector<8x1xf32>
    %cst_157 = arith.constant 1.280000e+02 : f32
    %404 = vector.broadcast %cst_157 : f32 to vector<8x1xf32>
    %405 = arith.divf %403, %404 : vector<8x1xf32>
    %406 = vector.broadcast %398 : vector<8x1xf32> to vector<8x128xf32>
    %407 = arith.subf %390, %406 : vector<8x128xf32>
    %cst_158 = arith.constant 9.99999974E-6 : f32
    %408 = vector.broadcast %cst_158 : f32 to vector<8x1xf32>
    %409 = arith.addf %405, %408 : vector<8x1xf32>
    %410 = math.rsqrt %409 : vector<8x1xf32>
    %411 = vector.broadcast %410 : vector<8x1xf32> to vector<8x128xf32>
    %412 = arith.mulf %407, %411 : vector<8x128xf32>
    %413 = vector.broadcast %392 : vector<1x128xf32> to vector<8x128xf32>
    %414 = arith.mulf %412, %413 : vector<8x128xf32>
    %415 = vector.broadcast %394 : vector<1x128xf32> to vector<8x128xf32>
    %416 = arith.addf %414, %415 : vector<8x128xf32>
    %417 = arith.truncf %416 : vector<8x128xf32> to vector<8x128xbf16>
    %c0_159 = arith.constant 0 : index
    %c0_160 = arith.constant 0 : index
    %418 = vector.load %arg17[%c0_159, %c0_160] : memref<128x128xbf16, #tpu.memory_space<vmem>>, vector<128x128xbf16>
    %cst_161 = arith.constant dense<0.000000e+00> : vector<8x128xf32>
    %419 = tpu.matmul %417, %418, %cst_161 {dimension_numbers = #tpu.dot_dimension_numbers<[1], [0], [0], [1], [0, 0, 1, 1], [], []>} : vector<8x128xbf16>, vector<128x128xbf16>, vector<8x128xf32> -> vector<8x128xf32>
    %c0_162 = arith.constant 0 : index
    %c0_163 = arith.constant 0 : index
    %420 = vector.load %arg18[%c0_162, %c0_163] : memref<1x128xf32, #tpu.memory_space<vmem>>, vector<1x128xf32>
    %421 = vector.broadcast %420 : vector<1x128xf32> to vector<8x128xf32>
    %422 = arith.addf %419, %421 : vector<8x128xf32>
    %cst_164 = arith.constant 0.000000e+00 : f32
    %423 = vector.broadcast %cst_164 : f32 to vector<8x128xf32>
    %424 = arith.maximumf %422, %423 : vector<8x128xf32>
    %425 = arith.truncf %424 : vector<8x128xf32> to vector<8x128xbf16>
    %c0_165 = arith.constant 0 : index
    %c0_166 = arith.constant 0 : index
    %426 = vector.load %arg19[%c0_165, %c0_166] : memref<128x128xbf16, #tpu.memory_space<vmem>>, vector<128x128xbf16>
    %cst_167 = arith.constant dense<0.000000e+00> : vector<8x128xf32>
    %427 = tpu.matmul %425, %426, %cst_167 {dimension_numbers = #tpu.dot_dimension_numbers<[1], [0], [0], [1], [0, 0, 1, 1], [], []>} : vector<8x128xbf16>, vector<128x128xbf16>, vector<8x128xf32> -> vector<8x128xf32>
    %c0_168 = arith.constant 0 : index
    %c0_169 = arith.constant 0 : index
    %428 = vector.load %arg20[%c0_168, %c0_169] : memref<1x128xf32, #tpu.memory_space<vmem>>, vector<1x128xf32>
    %429 = vector.broadcast %428 : vector<1x128xf32> to vector<8x128xf32>
    %430 = arith.addf %427, %429 : vector<8x128xf32>
    %c0_170 = arith.constant 0 : index
    %c0_171 = arith.constant 0 : index
    %431 = vector.load %arg21[%c0_170, %c0_171] : memref<8x128xf32, #tpu.memory_space<vmem>>, vector<8x128xf32>
    tpu.vector_store %arg21[%c0_170, %c0_171], %430 {strides = array<i32>} : memref<8x128xf32, #tpu.memory_space<vmem>>, vector<8x128xf32>,
    return
  }
  func.func @transform_0(%arg0: i32) -> (i32, i32) {
    %c0_i32 = arith.constant 0 : i32
    %c0_i32_0 = arith.constant 0 : i32
    return %arg0, %c0_i32 : i32, i32
  }
  func.func @transform_1(%arg0: i32) -> (i32, i32, i32) {
    %c0_i32 = arith.constant 0 : i32
    %c0_i32_0 = arith.constant 0 : i32
    %c0_i32_1 = arith.constant 0 : i32
    return %arg0, %c0_i32, %c0_i32_0 : i32, i32, i32
  }
  func.func @transform_2(%arg0: i32) -> (i32, i32) {
    %c0_i32 = arith.constant 0 : i32
    %c0_i32_0 = arith.constant 0 : i32
    %c0_i32_1 = arith.constant 0 : i32
    return %c0_i32, %c0_i32_0 : i32, i32
  }
  func.func @transform_3(%arg0: i32) -> (i32, i32) {
    %c0_i32 = arith.constant 0 : i32
    %c0_i32_0 = arith.constant 0 : i32
    %c0_i32_1 = arith.constant 0 : i32
    return %c0_i32, %c0_i32_0 : i32, i32
  }
  func.func @transform_4(%arg0: i32) -> (i32, i32, i32) {
    %c0_i32 = arith.constant 0 : i32
    %c0_i32_0 = arith.constant 0 : i32
    %c0_i32_1 = arith.constant 0 : i32
    %c0_i32_2 = arith.constant 0 : i32
    return %c0_i32, %c0_i32_0, %c0_i32_1 : i32, i32, i32
  }
  func.func @transform_5(%arg0: i32) -> (i32, i32, i32) {
    %c0_i32 = arith.constant 0 : i32
    %c0_i32_0 = arith.constant 0 : i32
    %c0_i32_1 = arith.constant 0 : i32
    %c0_i32_2 = arith.constant 0 : i32
    return %c0_i32, %c0_i32_0, %c0_i32_1 : i32, i32, i32
  }
  func.func @transform_6(%arg0: i32) -> (i32, i32, i32) {
    %c0_i32 = arith.constant 0 : i32
    %c0_i32_0 = arith.constant 0 : i32
    %c0_i32_1 = arith.constant 0 : i32
    %c0_i32_2 = arith.constant 0 : i32
    return %c0_i32, %c0_i32_0, %c0_i32_1 : i32, i32, i32
  }
  func.func @transform_7(%arg0: i32) -> (i32, i32, i32) {
    %c0_i32 = arith.constant 0 : i32
    %c0_i32_0 = arith.constant 0 : i32
    %c0_i32_1 = arith.constant 0 : i32
    %c0_i32_2 = arith.constant 0 : i32
    return %c0_i32, %c0_i32_0, %c0_i32_1 : i32, i32, i32
  }
  func.func @transform_8(%arg0: i32) -> (i32, i32, i32) {
    %c0_i32 = arith.constant 0 : i32
    %c0_i32_0 = arith.constant 0 : i32
    %c0_i32_1 = arith.constant 0 : i32
    %c0_i32_2 = arith.constant 0 : i32
    return %c0_i32, %c0_i32_0, %c0_i32_1 : i32, i32, i32
  }
  func.func @transform_9(%arg0: i32) -> (i32, i32, i32) {
    %c0_i32 = arith.constant 0 : i32
    %c0_i32_0 = arith.constant 0 : i32
    %c0_i32_1 = arith.constant 0 : i32
    %c0_i32_2 = arith.constant 0 : i32
    return %c0_i32, %c0_i32_0, %c0_i32_1 : i32, i32, i32
  }
  func.func @transform_10(%arg0: i32) -> (i32, i32, i32) {
    %c0_i32 = arith.constant 0 : i32
    %c0_i32_0 = arith.constant 0 : i32
    %c0_i32_1 = arith.constant 0 : i32
    %c0_i32_2 = arith.constant 0 : i32
    return %c0_i32, %c0_i32_0, %c0_i32_1 : i32, i32, i32
  }
  func.func @transform_11(%arg0: i32) -> (i32, i32, i32) {
    %c0_i32 = arith.constant 0 : i32
    %c0_i32_0 = arith.constant 0 : i32
    %c0_i32_1 = arith.constant 0 : i32
    %c0_i32_2 = arith.constant 0 : i32
    return %c0_i32, %c0_i32_0, %c0_i32_1 : i32, i32, i32
  }
  func.func @transform_12(%arg0: i32) -> (i32, i32, i32) {
    %c0_i32 = arith.constant 0 : i32
    %c0_i32_0 = arith.constant 0 : i32
    %c0_i32_1 = arith.constant 0 : i32
    %c0_i32_2 = arith.constant 0 : i32
    return %c0_i32, %c0_i32_0, %c0_i32_1 : i32, i32, i32
  }
  func.func @transform_13(%arg0: i32) -> (i32, i32, i32) {
    %c0_i32 = arith.constant 0 : i32
    %c0_i32_0 = arith.constant 0 : i32
    %c0_i32_1 = arith.constant 0 : i32
    %c0_i32_2 = arith.constant 0 : i32
    return %c0_i32, %c0_i32_0, %c0_i32_1 : i32, i32, i32
  }
  func.func @transform_14(%arg0: i32) -> (i32, i32, i32) {
    %c0_i32 = arith.constant 0 : i32
    %c0_i32_0 = arith.constant 0 : i32
    %c0_i32_1 = arith.constant 0 : i32
    %c0_i32_2 = arith.constant 0 : i32
    return %c0_i32, %c0_i32_0, %c0_i32_1 : i32, i32, i32
  }
  func.func @transform_15(%arg0: i32) -> (i32, i32, i32) {
    %c0_i32 = arith.constant 0 : i32
    %c0_i32_0 = arith.constant 0 : i32
    %c0_i32_1 = arith.constant 0 : i32
    %c0_i32_2 = arith.constant 0 : i32
    return %c0_i32, %c0_i32_0, %c0_i32_1 : i32, i32, i32
  }
  func.func @transform_16(%arg0: i32) -> (i32, i32) {
    %c0_i32 = arith.constant 0 : i32
    %c0_i32_0 = arith.constant 0 : i32
    %c0_i32_1 = arith.constant 0 : i32
    return %c0_i32, %c0_i32_0 : i32, i32
  }
  func.func @transform_17(%arg0: i32) -> (i32, i32) {
    %c0_i32 = arith.constant 0 : i32
    %c0_i32_0 = arith.constant 0 : i32
    %c0_i32_1 = arith.constant 0 : i32
    return %c0_i32, %c0_i32_0 : i32, i32
  }
  func.func @transform_18(%arg0: i32) -> (i32, i32) {
    %c0_i32 = arith.constant 0 : i32
    %c0_i32_0 = arith.constant 0 : i32
    %c0_i32_1 = arith.constant 0 : i32
    return %c0_i32, %c0_i32_0 : i32, i32
  }
  func.func @transform_19(%arg0: i32) -> (i32, i32) {
    %c0_i32 = arith.constant 0 : i32
    %c0_i32_0 = arith.constant 0 : i32
    %c0_i32_1 = arith.constant 0 : i32
    return %c0_i32, %c0_i32_0 : i32, i32
  }
  func.func @transform_20(%arg0: i32) -> (i32, i32) {
    %c0_i32 = arith.constant 0 : i32
    %c0_i32_0 = arith.constant 0 : i32
    return %arg0, %c0_i32 : i32, i32
  }
}

</mosaic_0001>

<bundles_post_ra>
// kernel: roberta_class_forward.1
= control target key start
LH: loop header
LB: loop body
LE: loop exit
PB: predicated region body
PF: predicated region fallthrough
CT: control target
= control target key end

     0   :  { %s4323_s0 = inlined_call_operand.vmem [shape: f32[16,128], index: 0, kind: input, shape index: {}]   ;;  %s4324_s1 = inlined_call_operand.vmem [shape: f32[2,1,8], index: 1, kind: input, shape index: {}]   ;;  %s4325_s2 = inlined_call_operand.vmem [shape: f32[1,128], index: 2, kind: input, shape index: {}]   ;;  %s4326_s3 = inlined_call_operand.vmem [shape: f32[1,128], index: 3, kind: input, shape index: {}]   ;;  %s4327_s4 = inlined_call_operand.hbm [shape: bf16[2,128,384], index: 4, kind: input, shape index: {}]   ;;  %s4328_s5 = inlined_call_operand.vmem [shape: f32[2,1,384], index: 5, kind: input, shape index: {}]   ;;  %s4329_s6 = inlined_call_operand.vmem [shape: bf16[2,128,128], index: 6, kind: input, shape index: {}]   ;;  %s4330_s7 = inlined_call_operand.vmem [shape: f32[2,1,128], index: 7, kind: input, shape index: {}]   ;;  %s4331_s8 = inlined_call_operand.vmem [shape: f32[2,1,128], index: 8, kind: input, shape index: {}]   ;;  %s4332_s9 = inlined_call_operand.vmem [shape: f32[2,1,128], index: 9, kind: input, shape index: {}]   ;;  %s4333_s10 = inlined_call_operand.hbm [shape: bf16[2,128,256], index: 10, kind: input, shape index: {}]   ;;  %s4334_s11 = inlined_call_operand.vmem [shape: f32[2,1,256], index: 11, kind: input, shape index: {}]   ;;  %s4335_s12 = inlined_call_operand.hbm [shape: bf16[2,256,128], index: 12, kind: input, shape index: {}]   ;;  %s4336_s13 = inlined_call_operand.vmem [shape: f32[2,1,128], index: 13, kind: input, shape index: {}]   ;;  %s4337_s14 = inlined_call_operand.vmem [shape: f32[2,1,128], index: 14, kind: input, shape index: {}]   ;;  %s4338_s15 = inlined_call_operand.vmem [shape: f32[2,1,128], index: 15, kind: input, shape index: {}]   ;;  %s4339_s16 = inlined_call_operand.vmem [shape: bf16[128,128], index: 16, kind: input, shape index: {}]   ;;  %s4340_s17 = inlined_call_operand.vmem [shape: f32[1,128], index: 17, kind: input, shape index: {}]   ;;  %s4341_s18 = inlined_call_operand.vmem [shape: bf16[128,128], index: 18, kind: input, shape index: {}]   ;;  %s4342_s19 = inlined_call_operand.vmem [shape: f32[1,128], index: 19, kind: input, shape index: {}]   ;;  %s4343_s20 = inlined_call_operand.vmem [shape: f32[16,128], index: 20, kind: output, shape index: {}]  }
   0x1   :  { %4346 = sst [smem:[#allocation10_spill]] %s4323_s0 }
   0x2   :  { %4347 = sst [smem:[#allocation11_spill]] %s4324_s1 }
   0x3   :  { %4348 = sst [smem:[#allocation12_spill]] %s4325_s2 }
   0x4   :  { %4349 = sst [smem:[#allocation13_spill]] %s4326_s3 }
   0x5   :  { %4350 = sst [smem:[#allocation14_spill]] %s4327_s4 }
   0x6   :  { %4351 = sst [smem:[#allocation15_spill]] %s4333_s10 }
   0x7   :  { %4352 = sst [smem:[#allocation16_spill]] %s4340_s17 }
   0x8   :  { %4353 = sst [smem:[#allocation17_spill]] %s4342_s19 }
   0x9   :  { %4354 = sst [smem:[#allocation18_spill]] %s4343_s20 }
   0xa   :  { %25 = vsyncpa [#allocation3], 0 }
   0xb   :  { %26 = vsyncpa [#allocation5], 0  ;;  %s3937_s1 = smov 0  }
   0xc LB: > { %4355 = sst [smem:[#allocation9_spill]] %s3817_s1  ;;  %s3946_s2 = sadd.s32 4294967295, %s3817_s1   ;;  %s3817_s1 = sphi %s3937_s1, %s32_s1  }
   0xd   : > { %s4356_s10 = sld [smem:[#allocation15_spill]]  ;;  %p2822_p0 = scmp.ge.s32.totalorder %s3817_s1, 1 }
   0xe   : > { %p493_p1 = scmp.lt.s32.totalorder %s3817_s1, 3  ;;  %p3617_p2 = scmp.eq.s32.totalorder %s3946_s2, 0 }
   0xf   : > { %s3819_s3 = smov [#allocation4]   ;;  %s4358_s4 = sld [smem:[#allocation14_spill]] }
  0x10   : > { %p3951_p3 = pnand %p2822_p0, %p493_p1  ;;  %s541_s26 = sshll.u32 %s3819_s3, 4  ;;  %s542_s26 = int_to_ptr.vmem [resolvable:$true] %s541_s26 }
  0x11   : > { %s3820_s0 = smov [#allocation2]   ;;  %s3821_s22 = smov 128  }
  0x12   : > { %p3607_p4 = pneg %p3951_p3  ;;  %s512_s21 = sshll.u32 %s3820_s0, 4  ;;  %s513_s21 = int_to_ptr.vmem [resolvable:$true] %s512_s21 }
  0x13   : > { %s539_s24 = sshll.u32 %s4356_s10, 4  ;;  %s3822_s23 = smov 8   ;;  %s540_s24 = int_to_ptr.hbm [resolvable:$true] %s539_s24 }
  0x14   : > { %p3962_p5 = pnand %p3617_p2, %p3607_p4  ;;  %s556_s27 = sshll.u32 %s4335_s12, 4  ;;  %s557_s27 = int_to_ptr.hbm [resolvable:$true] %s556_s27 }
  0x15   : > { %s510_s29 = sshll.u32 %s4358_s4, 4  ;;  %s3823_s28 = smov 192   ;;  %s511_s29 = int_to_ptr.hbm [resolvable:$true] %s510_s29 }
  0x16   : > { %3613 = dma.hbm_to_vmem [thread:$0]  (!%p3962_p5), %s540_s24, 4096, %s542_s26, [#allocation5], %s3821_s22, %s3821_s22, %s3822_s23  }
  0x17   : > { %s3824_s4 = smov 12   ;;  %s3825_s1 = smov [#allocation6]  }
  0x18   : > { %3610 = dma.hbm_to_vmem [thread:$0]  (!%p3962_p5), %s511_s29, 6144, %s513_s21, [#allocation3], %s3823_s28, %s3823_s28, %s3824_s4  }
  0x19   : > { %s558_s20 = sshll.u32 %s3825_s1, 4  ;;  %s3826_s19 = smov 64   ;;  %s559_s20 = int_to_ptr.vmem [resolvable:$true] %s558_s20 }
  0x1a   : > { %s3827_s17 = smov 4   ;;  %608 = sbr.rel (%p3951_p3) target bundleno = 4596 (0x11f4), region = 100 }
  0x1b   : > { %3616 = dma.hbm_to_vmem [thread:$0]  (!%p3962_p5), %s557_s27, 4096, %s559_s20, [#allocation5], %s3826_s19, %s3826_s19, %s3827_s17  }
  0x1f   : > { %3808 = dma.done.wait (%p3617_p2), [#allocation3], 6144  }
  0x20   : > { %3810 = vsyncadd (%p3617_p2), [#allocation3], 4294961152 }
  0x21   : > { %3812 = dma.done.wait (%p3617_p2), [#allocation5], 8192  }
  0x22   : > { %3814 = vsyncadd (%p3617_p2), [#allocation5], 4294959104  ;;  %p678_p6 = scmp.lt.s32.totalorder %s3946_s2, 1  ;;  %s4360_s20 = sld [smem:[#allocation10_spill]]  ;;  %v3828_v1 = vmov 128.0   ;;  %vm940_vm4 = vcmask 261120  }
  0x23   : > { %s4361_s26 = sld [smem:[#allocation11_spill]]  ;;  %3661 = vrcp.f32 %v3828_v1  ;;  %v2919_v2 = vld [vmem:[#allocation2 + $0xa8] sm:$0xf]  ;;  %v3473_v3 = vld [vmem:[#allocation2 + $0xb0] sm:$0xf0]  ;;  %s3829_s4 = smov 64  }
  0x24   : > { %s4369_s2 = smov (!%p678_p6, %s3946_s2), 1  ;;  %v3472_v4 = vld [vmem:[#allocation2 + $0xac] sm:$0xf]  ;;  %v2920_v5 = vor.u32 %v3473_v3, %v2919_v2  ;;  %v2921_v6 = vld [vmem:[#allocation2 + $0xb4] sm:$0xf0]  ;;  %s4362_s21 = sld [smem:[#allocation12_spill]] }
  0x25   : > { %s2831_s10 = sshll.u32 %s4369_s2, 3  ;;  %v2927_v7 = vld [vmem:[#allocation2 + $0xb0] sm:$0xf]  ;;  %v3474_v8 = vld [vmem:[#allocation2 + $0xb8] sm:$0xf0]  ;;  %v2924_v9 = vor.u32 %v3472_v4, %v2921_v6  ;;  %s4363_s3 = sld [smem:[#allocation13_spill]] }
  0x26   : > { %v2928_v10 = vor.u32 %v3474_v8, %v2927_v7  ;;  %898 = vmatpush.bf16.msra.mxu0 %v2920_v5  ;;  %v2907_v21 = vld [vmem:[#allocation2 + $0x90] sm:$0xf]  ;;  %v3470_v22 = vld [vmem:[#allocation2 + $0x98] sm:$0xf0]  ;;  %v3469_v23 = vld [vmem:[#allocation2 + $0x94] sm:$0xf] }
  0x27   : > { %911 = vmatpush.bf16.msra.mxu1 %v2924_v9  ;;  %v2908_v24 = vor.u32 %v3470_v22, %v2907_v21  ;;  %v2909_v25 = vld [vmem:[#allocation2 + $0x9c] sm:$0xf0]  ;;  %v2915_v26 = vld [vmem:[#allocation2 + $0x98] sm:$0xf]  ;;  %v3471_v27 = vld [vmem:[#allocation2 + $0xa0] sm:$0xf0] }
  0x28   : > { %s681_s1 = scalar_lea.vmem %s4360_s20, %s2831_s10  ;;  %924 = vmatpush.bf16.msra.mxu2 %v2928_v10  ;;  %v2912_v28 = vor.u32 %v3469_v23, %v2909_v25  ;;  %v2916_v29 = vor.u32 %v3471_v27, %v2915_v26  ;;  %v2895_v30 = vld [vmem:[#allocation2 + $0x78] sm:$0xf]  ;;  %v3467_v31 = vld [vmem:[#allocation2 + $0x80] sm:$0xf0]  ;;  %v3466_v32 = vld [vmem:[#allocation2 + $0x7c] sm:$0xf] }
  0x29   : > { %s684_s29 = scalar_lea.vmem %s4361_s26, %s4369_s2  ;;  %v690_v0 = vld [vmem:[%s681_s1] sm:$0xff]  ;;  %v3662_v11 = vpop.eup %3661  ;;  %v2896_v33 = vor.u32 %v3467_v31, %v2895_v30  ;;  %v2897_v34 = vld [vmem:[#allocation2 + $0x84] sm:$0xf0]  ;;  %v3468_v36 = vld [vmem:[#allocation2 + $0x88] sm:$0xf0]  ;;  %s3830_s17 = smov 96  }
  0x2a   : > { %693 = vadd.xlane.f32.xlu0 %v690_v0  ;;  %v696_v12 = vmul.f32 128.0, %v3662_v11  ;;  %vm700_vm0 = vweird.f32 %v3662_v11  ;;  %899 = vmatpush.bf16.msra.mxu0 %v2908_v24  ;;  %v2903_v35 = vld [vmem:[#allocation2 + $0x80] sm:$0xf]  ;;  %v2900_v37 = vor.u32 %v3466_v32, %v2897_v34  ;;  %v3464_v40 = vld [vmem:[#allocation2 + $0x68] sm:$0xf0]  ;;  %vm981_vm5 = vcmask 1043456  }
  0x2b   : > { %912 = vmatpush.bf16.msra.mxu1 %v2912_v28  ;;  %v2904_v38 = vor.u32 %v3468_v36, %v2903_v35  ;;  %v2883_v39 = vld [vmem:[#allocation2 + $0x60] sm:$0xf]  ;;  %v3463_v41 = vld [vmem:[#allocation2 + $0x64] sm:$0xf]  ;;  %v2885_v43 = vld [vmem:[#allocation2 + $0x6c] sm:$0xf0] }
  0x2c   : > { %v697_v13 = vsub.f32 1.0, %v696_v12  ;;  %925 = vmatpush.bf16.msra.mxu2 %v2916_v29  ;;  %v2884_v42 = vor.u32 %v3464_v40, %v2883_v39  ;;  %v2891_v44 = vld [vmem:[#allocation2 + $0x68] sm:$0xf]  ;;  %v3465_v45 = vld [vmem:[#allocation2 + $0x70] sm:$0xf0]  ;;  %v2888_v46 = vor.u32 %v3463_v41, %v2885_v43  ;;  %s3831_s19 = smov 32  }
  0x2d   : > { %v2892_v47 = vor.u32 %v3465_v45, %v2891_v44  ;;  %v2871_v48 = vld [vmem:[#allocation2 + $0x48] sm:$0xf]  ;;  %v3461_v49 = vld [vmem:[#allocation2 + $0x50] sm:$0xf0]  ;;  %v3460_v50 = vld [vmem:[#allocation2 + $0x4c] sm:$0xf] }
  0x2e   : > { %v698_v14 = vmul.f32 %v3662_v11, %v697_v13  ;;  %900 = vmatpush.bf16.msra.mxu0 %v2896_v33  ;;  %v2872_v51 = vor.u32 %v3461_v49, %v2871_v48  ;;  %v2873_v52 = vld [vmem:[#allocation2 + $0x54] sm:$0xf0]  ;;  %v2879_v53 = vld [vmem:[#allocation2 + $0x50] sm:$0xf]  ;;  %v3462_v54 = vld [vmem:[#allocation2 + $0x58] sm:$0xf0] }
  0x2f   : > { %913 = vmatpush.bf16.msra.mxu1 %v2900_v37  ;;  %v2876_v55 = vor.u32 %v3460_v50, %v2873_v52  ;;  %v2880_v56 = vor.u32 %v3462_v54, %v2879_v53  ;;  %v2859_v57 = vld [vmem:[#allocation2 + $0x30] sm:$0xf]  ;;  %v3458_v58 = vld [vmem:[#allocation2 + $0x38] sm:$0xf0]  ;;  %v3457_v59 = vld [vmem:[#allocation2 + $0x34] sm:$0xf] }
  0x30   : > { %v699_v15 = vadd.f32 %v3662_v11, %v698_v14  ;;  %926 = vmatpush.bf16.msra.mxu2 %v2904_v38  ;;  %v2860_v60 = vor.u32 %v3458_v58, %v2859_v57  ;;  %v2861_v61 = vld [vmem:[#allocation2 + $0x3c] sm:$0xf0]  ;;  %v2867_v62 = vld [vmem:[#allocation2 + $0x38] sm:$0xf]  ;;  %v3459_v63 = vld [vmem:[#allocation2 + $0x40] sm:$0xf0] }
  0x31   : > { %v2868_v1 = vor.u32 %v3459_v63, %v2867_v62  ;;  %v2847_v2 = vld [vmem:[#allocation2 + $0x18] sm:$0xf]  ;;  %v3455_v3 = vld [vmem:[#allocation2 + $0x20] sm:$0xf0]  ;;  %v3454_v4 = vld [vmem:[#allocation2 + $0x1c] sm:$0xf] }
  0x32   : > { %v3999_v16 = vsel %vm700_vm0, %v3662_v11, %v699_v15  ;;  %901 = vmatpush.bf16.msra.mxu0 %v2884_v42  ;;  %v2848_v5 = vor.u32 %v3455_v3, %v2847_v2  ;;  %v2849_v6 = vld [vmem:[#allocation2 + $0x24] sm:$0xf0]  ;;  %v2855_v7 = vld [vmem:[#allocation2 + $0x20] sm:$0xf]  ;;  %v3456_v8 = vld [vmem:[#allocation2 + $0x28] sm:$0xf0] }
  0x33   : > { %914 = vmatpush.bf16.msra.mxu1 %v2888_v46  ;;  %v2852_v9 = vor.u32 %v3454_v4, %v2849_v6  ;;  %v2856_v10 = vor.u32 %v3456_v8, %v2855_v7  ;;  %v2835_v11 = vld [vmem:[#allocation2] sm:$0xf]  ;;  %v3452_v12 = vld [vmem:[#allocation2 + $0x8] sm:$0xf0]  ;;  %v3451_v13 = vld [vmem:[#allocation2 + $0x4] sm:$0xf] }
  0x34   : > { %927 = vmatpush.bf16.msra.mxu2 %v2892_v47  ;;  %v2836_v14 = vor.u32 %v3452_v12, %v2835_v11  ;;  %v2837_v15 = vld [vmem:[#allocation2 + $0xc] sm:$0xf0]  ;;  %v3645_v31 = vld [vmem:[%s4362_s21] ss:$0 sm:$0xff]  ;;  %vm965_vm6 = vcmask 64512   ;;  %vm1188_vm7 = vcmask 523264  }
  0x35   : > { %v3646_v34 = vld [vmem:[%s4363_s3] ss:$0 sm:$0xff]  ;;  %vm1190_vm8 = vcmask 785408   ;;  %s4364_s22 = sld [smem:[#allocation16_spill]] }
  0x36   : > { %902 = vmatpush.bf16.msra.mxu0 %v2872_v51  ;;  %v762_v38 = vld [vmem:[%s4328_s5] sm:$0x7]  ;;  %s4365_s27 = sld [smem:[#allocation17_spill]] }
  0x37   : > { %915 = vmatpush.bf16.msra.mxu1 %v2876_v55  ;;  %v765_v39 = vperm.slane %v762_v38, 1  ;;  %v764_v42 = vperm.slane %v762_v38, 0  ;;  %v766_v44 = vperm.slane %v762_v38, 2  ;;  %s4366_s1 = sld [smem:[#allocation18_spill]] }
  0x38   : > { %928 = vmatpush.bf16.msra.mxu2 %v2880_v56 }
  0x3a   : > { %903 = vmatpush.bf16.msra.mxu0 %v2860_v60 }
  0x3c   : > { %929 = vmatpush.bf16.msra.mxu2 %v2868_v1 }
  0x3d   : > { %s688_s24 = scalar_lea.vmem %s4366_s1, %s2831_s10 }
  0x3e   : > { %904 = vmatpush.bf16.msra.mxu0 %v2848_v5 }
  0x40   : > { %930 = vmatpush.bf16.msra.mxu2 %v2856_v10 }
  0x42   : > { %905 = vmatpush.bf16.msra.mxu0 %v2836_v14 }
  0x9d   : > { %v694_v17 = vpop.xlane.xlu0 %693 }
  0x9e   : > { %v702_v18 = vmul.f32 %v3999_v16, %v694_v17  ;;  %v2843_v17 = vld [vmem:[#allocation2 + $0x8] sm:$0xf] }
  0xa0   : > { %v4002_v19 = vsub.f32 %v690_v0, %v702_v18  ;;  %v2864_v0 = vor.u32 %v3457_v59, %v2861_v61  ;;  %v3453_v18 = vld [vmem:[#allocation2 + $0x10] sm:$0xf0]  ;;  %v4040_v61 = vld [vmem:[%s684_s29] ss:$0 sm:$0xff] }
  0xa1   : > { %v2844_v21 = vor.u32 %v3453_v18, %v2843_v17 }
  0xa2   : > { %v704_v20 = vmul.f32 %v4002_v19, %v4002_v19  ;;  %916 = vmatpush.bf16.msra.mxu1 %v2864_v0 }
  0xa3   : > { %931 = vmatpush.bf16.msra.mxu2 %v2844_v21 }
  0xa4   : > { %705 = vadd.xlane.f32.xlu0 %v704_v20  ;;  %v2840_v20 = vor.u32 %v3451_v13, %v2837_v15 }
  0xa6   : > { %917 = vmatpush.bf16.msra.mxu1 %v2852_v9 }
  0xaa   : > { %918 = vmatpush.bf16.msra.mxu1 %v2840_v20 }
 0x117   : > { %v706_v22 = vpop.xlane.xlu0 %705 }
 0x118   : > { %v707_v23 = vmul.f32 %v706_v22, %v3999_v16 }
 0x11a   : > { %v708_v24 = vadd.f32 1e-05, %v707_v23 }
 0x11c   : > { %3663 = vrsqrt.f32 %v708_v24  ;;  %vm715_vm2 = vweird.f32 %v708_v24 }
 0x122   : > { %v3664_v25 = vpop.eup %3663 }
 0x123   : > { %v710_v26 = vmul.f32 %v3664_v25, %v708_v24  ;;  %vm716_vm1 = vweird.f32 %v3664_v25 }
 0x124   : > { %vm717_vm3 = vmor %vm715_vm2, %vm716_vm1 }
 0x125   : > { %v711_v27 = vmul.f32 %v3664_v25, %v710_v26 }
 0x127   : > { %v712_v28 = vmul.f32 0.5, %v711_v27 }
 0x129   : > { %v713_v29 = vsub.f32 1.5, %v712_v28 }
 0x12b   : > { %v714_v30 = vmul.f32 %v3664_v25, %v713_v29 }
 0x12d   : > { %v718_v32 = vsel %vm717_vm3, %v3664_v25, %v714_v30 }
 0x12e   : > { %v719_v33 = vmul.f32 %v718_v32, %v4002_v19 }
 0x130   : > { %v723_v35 = vmul.f32 %v3645_v31, %v719_v33 }
 0x132   : > { %v4014_v36 = vadd.f32 %v3646_v34, %v723_v35 }
 0x134   : > { %v729_v37 = vpack.c.bf16 %v4014_v36, %v4014_v36 }
 0x136   : > { %906 = vmatmul.bf16.vlgmr.msra.gmra.mxu0 %v729_v37  ;;  %919 = vmatmul.bf16.vlgmr.msra.gmra.mxu1 %v729_v37 }
 0x137   : > { %932 = vmatmul.bf16.vlgmr.msra.gmra.mxu2 %v729_v37 }
 0x1b3   : > { %v907_v40 = vpop.f32.mrf.mxu0  ;;  %v920_v19 = vpop.f32.mrf.mxu1 }
 0x1b4   : > { %v921_v41 = vadd.f32 %v920_v19, %v765_v39  ;;  %v908_v46 = vadd.f32 %v907_v40, %v764_v42 }
 0x1b6   : > { %v938_v43 = vpack.c.bf16 %v921_v41, %v921_v41  ;;  %v937_v52 = vpack.c.bf16 %v908_v46, %v908_v46 }
 0x1b8   : > { %1061 = vrot.lane.b32.xlu0 %v938_v43, %s3829_s4  ;;  %1002 = vrot.lane.b32.xlu2 %v938_v43, %s3830_s17  ;;  %v945_v45 = vsel %vm940_vm4, %v938_v43, 0 }
 0x1b9   : > { %954 = vmatpush.bf16.xpose.msrb.mxu0 %v945_v45 }
 0x1ba   : > { %v933_v47 = vpop.f32.mrf.mxu2 }
 0x1bb   : > { %v934_v48 = vadd.f32 %v933_v47, %v766_v44  ;;  %v909_v49 = vpop.f32.mrf.mxu0  ;;  %v922_v50 = vpop.f32.mrf.mxu1 }
 0x1bd   : > { %v4024_v51 = vpack.c.bf16 %v934_v48, %v934_v48 }
 0x1bf   : > { %v983_v53 = vsel %vm981_vm5, %v4024_v51, 0 }
 0x1c0   : > { %992 = vmatpush.bf16.msra.mxu3 %v983_v53  ;;  %999 = vrot.lane.b32.xlu2 %v937_v52, %s3830_s17 }
 0x1c1   : > { %2929 = vmatmul.msk.bf16.vlgmr.msrb.gmra.mxu0 %vm940_vm4, %v937_v52 }
 0x1c2   : > { %v935_v54 = vpop.f32.mrf.mxu2 }
 0x1c8   : > { %1059 = vrot.lane.b32.xlu2 %v937_v52, %s3829_s4 }
 0x1d0   : > { %1117 = vrot.lane.b32.xlu2 %v937_v52, %s3831_s19 }
 0x212   : > { %v1003_v55 = vpop.permute.xlu2 %1002 }
 0x213   : > { %v1008_v56 = vsel %vm940_vm4, %v1003_v55, 0 }
 0x214   : > { %1017 = vmatpush.bf16.xpose.msrb.mxu3 %v1008_v56 }
 0x21a   : > { %v1000_v57 = vpop.permute.xlu2 %999 }
 0x222   : > { %v1060_v60 = vpop.permute.xlu2 %1059 }
 0x22a   : > { %v1062_v58 = vpop.permute.xlu0 %1061  ;;  %v1118_v24 = vpop.permute.xlu2 %1117 }
 0x22b   : > { %v1067_v59 = vsel %vm940_vm4, %v1062_v58, 0 }
 0x22c   : > { %1076 = vmatpush.bf16.xpose.msrb.mxu1 %v1067_v59 }
 0x233   : > { %2933 = vmatmul.msk.bf16.vlgmr.msrb.gmra.mxu1 %vm940_vm4, %v1060_v60 }
 0x23e   : > { %v956_v62 = vpop.f32.mrf.mxu0 }
 0x23f   : > { %v960_v63 = vmul.f32 0.17677669, %v956_v62 }
 0x241   : > { %v964_v0 = vadd.f32 %v4040_v61, %v960_v63 }
 0x243   : > { %v966_v1 = vsel %vm965_vm6, %v964_v0, -inf }
 0x244   : > { %967 = vmax.xlane.f32.xlu1 %v966_v1 }
 0x246   : > { %v958_v2 = vpop.f32.mrf.mxu0 }
 0x2b0   : > { %v1078_v3 = vpop.f32.mrf.mxu1 }
 0x2b1   : > { %v1082_v4 = vmul.f32 0.17677669, %v1078_v3 }
 0x2b3   : > { %v1083_v5 = vadd.f32 %v4040_v61, %v1082_v4 }
 0x2b5   : > { %v1084_v6 = vsel %vm965_vm6, %v1083_v5, -inf }
 0x2b6   : > { %1085 = vmax.xlane.f32.xlu0 %v1084_v6 }
 0x2b7   : > { %v968_v7 = vpop.xlane.xlu1 %967 }
 0x2b8   : > { %v969_v8 = vsub.f32 %v964_v0, %v968_v7  ;;  %v1080_v9 = vpop.f32.mrf.mxu1  ;;  %v3482_v7 = vld [vmem:[%s4329_s6 + $0x38] sm:$0xff] }
 0x2b9   : > { %1261 = vmatpush.bf16.msra.mxu1 %v3482_v7 }
 0x2ba   : > { %v970_v10 = vmul.f32 1.442695, %v969_v8  ;;  %v3481_v8 = vld [vmem:[%s4329_s6 + $0x30] sm:$0xff] }
 0x2bc   : > { %3665 = vpow2.f32 %v970_v10  ;;  %v3480_v10 = vld [vmem:[%s4329_s6 + $0x28] sm:$0xff] }
 0x2bd   : > { %1262 = vmatpush.bf16.msra.mxu1 %v3481_v8  ;;  %v2979_v8 = vld [vmem:[#allocation4 + $0x10] sm:$0xf] }
 0x2c1   : > { %1263 = vmatpush.bf16.msra.mxu1 %v3480_v10  ;;  %v3485_v10 = vld [vmem:[#allocation4 + $0x14] sm:$0xf] }
 0x2c2   : > { %v3666_v11 = vpop.eup %3665 }
 0x2c3   : > { %v972_v12 = vsel %vm965_vm6, %v3666_v11, 0.0 }
 0x2c4   : > { %973 = vadd.xlane.f32.xlu1 %v972_v12  ;;  %v3478_v12 = vld [vmem:[%s4329_s6 + $0x18] sm:$0xff] }
 0x2ca   : > { %1038 = vrot.lane.b32.xlu0 %v4024_v51, %s3830_s17 }
 0x2dd   : > { %1119 = vrot.lane.b32.xlu1 %v938_v43, %s3831_s19 }
 0x329   : > { %v1086_v13 = vpop.xlane.xlu0 %1085 }
 0x32a   : > { %v1087_v27 = vsub.f32 %v1083_v5, %v1086_v13 }
 0x32c   : > { %v1088_v28 = vmul.f32 1.442695, %v1087_v27 }
 0x337   : > { %v974_v14 = vpop.xlane.xlu1 %973 }
 0x338   : > { %3667 = vrcp.f32 %v974_v14 }
 0x339   : > { %3669 = vpow2.f32 %v1088_v28  ;;  %v3647_v28 = vld [vmem:[%s4330_s7] ss:$0 sm:$0xff] }
 0x33c   : > { %v1039_v15 = vpop.permute.xlu0 %1038 }
 0x33d   : > { %v1044_v17 = vsel %vm981_vm5, %v1039_v15, 0  ;;  %v3477_v15 = vld [vmem:[%s4329_s6 + $0x10] sm:$0xff] }
 0x33e   : > { %v3668_v18 = vpop.eup %3667  ;;  %1053 = vmatpush.bf16.msra.mxu0 %v1044_v17  ;;  %v3476_v17 = vld [vmem:[%s4329_s6 + $0x8] sm:$0xff] }
 0x33f   : > { %v976_v20 = vmul.f32 %v3668_v18, %v3666_v11  ;;  %v3670_v34 = vpop.eup %3669  ;;  %v3479_v11 = vld [vmem:[%s4329_s6 + $0x20] sm:$0xff] }
 0x340   : > { %v1090_v35 = vsel %vm965_vm6, %v3670_v34, 0.0  ;;  %1264 = vmatpush.bf16.msra.mxu1 %v3479_v11  ;;  %v3475_v18 = vld [vmem:[%s4329_s6] sm:$0xff] }
 0x341   : > { %v977_v21 = vpack.c.bf16 %v976_v20, %v976_v20 }
 0x343   : > { %2930 = vmatmul.msk.bf16.vlgmr.msra.gmra.mxu3 %vm965_vm6, %v977_v21 }
 0x344   : > { %1265 = vmatpush.bf16.msra.mxu1 %v3478_v12  ;;  %v2981_v12 = vld [vmem:[#allocation4 + $0x18] sm:$0xf0] }
 0x348   : > { %1266 = vmatpush.bf16.msra.mxu1 %v3477_v15  ;;  %v3484_v15 = vld [vmem:[#allocation4 + $0x4] sm:$0xf0] }
 0x34c   : > { %1267 = vmatpush.bf16.msra.mxu1 %v3476_v17  ;;  %v3483_v17 = vld [vmem:[#allocation4 + $0x4] sm:$0xf] }
 0x34f   : > { %v1120_v22 = vpop.permute.xlu1 %1119 }
 0x350   : > { %v1125_v23 = vsel %vm940_vm4, %v1120_v22, 0  ;;  %1268 = vmatpush.bf16.msra.mxu1 %v3475_v18 }
 0x351   : > { %1134 = vmatpush.bf16.xpose.msra.mxu3 %v1125_v23 }
 0x353   : > { %2931 = vmatmul.msk.bf16.vlgmr.msrb.gmra.mxu3 %vm940_vm4, %v1000_v57 }
 0x363   : > { %2935 = vmatmul.msk.bf16.vlgmr.msra.gmra.mxu3 %vm940_vm4, %v1118_v24 }
 0x3c6   : > { %v4055_v25 = vpop.f32.mrf.mxu3 }
 0x3ce   : > { %v996_v26 = vpop.f32.mrf.mxu3 }
 0x3d6   : > { %v1019_v29 = vpop.f32.mrf.mxu3 }
 0x3d7   : > { %v1023_v30 = vmul.f32 0.17677669, %v1019_v29 }
 0x3d9   : > { %v1024_v31 = vadd.f32 %v4040_v61, %v1023_v30 }
 0x3db   : > { %v1025_v32 = vsel %vm965_vm6, %v1024_v31, -inf }
 0x3dc   : > { %1026 = vmax.xlane.f32.xlu2 %v1025_v32 }
 0x3de   : > { %v1021_v33 = vpop.f32.mrf.mxu3 }
 0x3df   : > { %v3027_v33 = vld [vmem:[#allocation4 + $0x70] sm:$0xf] }
 0x3e4   : > { %1091 = vadd.xlane.f32.xlu2 %v1090_v35 }
 0x3e6   : > { %v1136_v37 = vpop.f32.mrf.mxu3 }
 0x3e7   : > { %v1140_v38 = vmul.f32 0.17677669, %v1136_v37  ;;  %v3029_v37 = vld [vmem:[#allocation4 + $0x78] sm:$0xf0] }
 0x3e9   : > { %v1141_v39 = vadd.f32 %v4040_v61, %v1140_v38 }
 0x3eb   : > { %v1142_v40 = vsel %vm965_vm6, %v1141_v39, -inf }
 0x3ec   : > { %1143 = vmax.xlane.f32.xlu1 %v1142_v40 }
 0x3ee   : > { %v1138_v19 = vpop.f32.mrf.mxu3 }
 0x44f   : > { %v1027_v41 = vpop.xlane.xlu2 %1026 }
 0x450   : > { %v1028_v42 = vsub.f32 %v1024_v31, %v1027_v41 }
 0x452   : > { %v1029_v43 = vmul.f32 1.442695, %v1028_v42  ;;  %v3496_v42 = vld [vmem:[#allocation4 + $0x64] sm:$0xf0] }
 0x454   : > { %3671 = vpow2.f32 %v1029_v43  ;;  %v3495_v43 = vld [vmem:[#allocation4 + $0x64] sm:$0xf] }
 0x457   : > { %v1092_v52 = vpop.xlane.xlu2 %1091 }
 0x45a   : > { %v3672_v44 = vpop.eup %3671 }
 0x45b   : > { %v1031_v45 = vsel %vm965_vm6, %v3672_v44, 0.0 }
 0x45c   : > { %1032 = vadd.xlane.f32.xlu2 %v1031_v45  ;;  %v3021_v45 = vld [vmem:[#allocation4 + $0x68] sm:$0xf0] }
 0x45f   : > { %v1144_v46 = vpop.xlane.xlu1 %1143 }
 0x460   : > { %v1145_v47 = vsub.f32 %v1141_v39, %v1144_v46  ;;  %v3024_v46 = vor.u32 %v3495_v43, %v3021_v45  ;;  %v3512_v43 = vld [vmem:[#allocation6 + $0x68] sm:$0xff]  ;;  %v3511_v45 = vld [vmem:[#allocation6 + $0x60] sm:$0xff] }
 0x462   : > { %v1146_v48 = vmul.f32 1.442695, %v1145_v47  ;;  %v3011_v47 = vld [vmem:[#allocation4 + $0x50] sm:$0xf] }
 0x464   : > { %3673 = vpow2.f32 %v1146_v48  ;;  %v3494_v48 = vld [vmem:[#allocation4 + $0x54] sm:$0xf0] }
 0x465   : > { %3675 = vrcp.f32 %v1092_v52  ;;  %v3013_v52 = vld [vmem:[#allocation4 + $0x58] sm:$0xf0] }
 0x46a   : > { %v3674_v49 = vpop.eup %3673 }
 0x46b   : > { %v1148_v50 = vsel %vm965_vm6, %v3674_v49, 0.0  ;;  %v3676_v54 = vpop.eup %3675 }
 0x46c   : > { %1149 = vadd.xlane.f32.xlu1 %v1148_v50  ;;  %v1094_v56 = vmul.f32 %v3676_v54, %v3670_v34  ;;  %v3497_v34 = vld [vmem:[#allocation4 + $0x74] sm:$0xf]  ;;  %v3012_v50 = vor.u32 %v3494_v48, %v3011_v47  ;;  %v3003_v54 = vld [vmem:[#allocation4 + $0x40] sm:$0xf] }
 0x46d   : > { %v3032_v38 = vor.u32 %v3497_v34, %v3029_v37  ;;  %v3501_v47 = vld [vmem:[#allocation6 + $0x10] sm:$0xff] }
 0x46e   : > { %v1095_v62 = vpack.c.bf16 %v1094_v56, %v1094_v56  ;;  %v3491_v56 = vld [vmem:[#allocation4 + $0x44] sm:$0xf]  ;;  %v3509_v48 = vld [vmem:[#allocation6 + $0x50] sm:$0xff] }
 0x46f   : > { %1421 = vmatpush.bf16.msrb.mxu3 %v3032_v38 }
 0x473   : > { %1422 = vmatpush.bf16.msrb.mxu3 %v3024_v46  ;;  %v3510_v46 = vld [vmem:[#allocation6 + $0x58] sm:$0xff] }
 0x474   : > { %1096 = vrot.lane.b32.xlu2 %v4024_v51, %s3829_s4 }
 0x485   : > { %1154 = vrot.lane.b32.xlu1 %v4024_v51, %s3831_s19 }
 0x4cf   : > { %v1033_v53 = vpop.xlane.xlu2 %1032 }
 0x4d0   : > { %3677 = vrcp.f32 %v1033_v53 }
 0x4d6   : > { %v3678_v55 = vpop.eup %3677 }
 0x4d7   : > { %v1035_v57 = vmul.f32 %v3678_v55, %v3672_v44  ;;  %v1097_v58 = vpop.permute.xlu2 %1096  ;;  %v3492_v55 = vld [vmem:[#allocation4 + $0x44] sm:$0xf0] }
 0x4d8   : > { %v1102_v59 = vsel %vm981_vm5, %v1097_v58, 0  ;;  %v3005_v58 = vld [vmem:[#allocation4 + $0x48] sm:$0xf0] }
 0x4d9   : > { %v1036_v60 = vpack.c.bf16 %v1035_v57, %v1035_v57  ;;  %1111 = vmatpush.bf16.msrb.mxu2 %v1102_v59  ;;  %v3004_v57 = vor.u32 %v3492_v55, %v3003_v54  ;;  %v3008_v59 = vor.u32 %v3491_v56, %v3005_v58  ;;  %v1322_v54 = vld [vmem:[%s4334_s11] sm:$0x3] }
 0x4da   : > { %v1324_v55 = vperm.slane %v1322_v54, 0  ;;  %v1325_v56 = vperm.slane %v1322_v54, 1 }
 0x4db   : > { %2932 = vmatmul.msk.bf16.vlgmr.msra.gmra.mxu0 %vm965_vm6, %v1036_v60  ;;  %v2995_v60 = vld [vmem:[#allocation4 + $0x30] sm:$0xf] }
 0x4dc   : > { %2934 = vmatmul.msk.bf16.vlgmr.msrb.gmra.mxu2 %vm965_vm6, %v1095_v62  ;;  %v3490_v62 = vld [vmem:[#allocation4 + $0x34] sm:$0xf0] }
 0x4df   : > { %v1150_v63 = vpop.xlane.xlu1 %1149 }
 0x4e0   : > { %3679 = vrcp.f32 %v1150_v63  ;;  %v3489_v63 = vld [vmem:[#allocation4 + $0x34] sm:$0xf] }
 0x4e6   : > { %v3680_v51 = vpop.eup %3679 }
 0x4e7   : > { %v1152_v0 = vmul.f32 %v3680_v51, %v3674_v49  ;;  %v3493_v49 = vld [vmem:[#allocation4 + $0x54] sm:$0xf]  ;;  %v2996_v51 = vor.u32 %v3490_v62, %v2995_v60 }
 0x4e8   : > { %v3016_v53 = vor.u32 %v3493_v49, %v3013_v52  ;;  %v3500_v49 = vld [vmem:[#allocation6 + $0x8] sm:$0xff]  ;;  %v3499_v52 = vld [vmem:[#allocation6] sm:$0xff] }
 0x4e9   : > { %v1153_v3 = vpack.c.bf16 %v1152_v0, %v1152_v0  ;;  %v2997_v0 = vld [vmem:[#allocation4 + $0x38] sm:$0xf0] }
 0x4ea   : > { %1423 = vmatpush.bf16.msrb.mxu3 %v3016_v53  ;;  %v3507_v53 = vld [vmem:[#allocation6 + $0x40] sm:$0xff] }
 0x4ee   : > { %1424 = vmatpush.bf16.msrb.mxu3 %v3008_v59 }
 0x4f7   : > { %v1155_v1 = vpop.permute.xlu1 %1154 }
 0x4f8   : > { %v1160_v2 = vsel %vm981_vm5, %v1155_v1, 0  ;;  %v3000_v1 = vor.u32 %v3489_v63, %v2997_v0 }
 0x4f9   : > { %1169 = vmatpush.bf16.msrb.mxu0 %v1160_v2  ;;  %v2987_v2 = vld [vmem:[#allocation4 + $0x20] sm:$0xf] }
 0x4fa   : > { %1425 = vmatpush.bf16.msrb.mxu3 %v3000_v1 }
 0x4fc   : > { %2936 = vmatmul.msk.bf16.vlgmr.msrb.gmra.mxu0 %vm965_vm6, %v1153_v3  ;;  %v3488_v3 = vld [vmem:[#allocation4 + $0x24] sm:$0xf0] }
 0x558   : > { %v1055_v4 = vpop.f32.mrf.mxu0 }
 0x559   : > { %1176 = vrot.lane.b32.xlu0 %v1055_v4, %s3831_s19  ;;  %v3487_v4 = vld [vmem:[#allocation4 + $0x24] sm:$0xf] }
 0x55f   : > { %v1113_v5 = vpop.f32.mrf.mxu2 }
 0x560   : > { %v1057_v6 = vpop.f32.mrf.mxu0 }
 0x561   : > { %1180 = vrot.lane.b32.xlu0 %v1113_v5, %s3829_s4  ;;  %v2988_v5 = vor.u32 %v3488_v3, %v2987_v2  ;;  %v2989_v6 = vld [vmem:[#allocation4 + $0x28] sm:$0xf0] }
 0x562   : > { %v2992_v7 = vor.u32 %v3487_v4, %v2989_v6 }
 0x564   : > { %1426 = vmatpush.bf16.msrb.mxu3 %v2992_v7 }
 0x567   : > { %v1115_v9 = vpop.f32.mrf.mxu2 }
 0x568   : > { %v3486_v9 = vld [vmem:[#allocation4 + $0x14] sm:$0xf0] }
 0x569   : > { %v2980_v11 = vor.u32 %v3486_v9, %v2979_v8 }
 0x579   : > { %v1171_v13 = vpop.f32.mrf.mxu0 }
 0x57a   : > { %1184 = vrot.lane.b32.xlu2 %v1171_v13, %s3830_s17  ;;  %v2984_v13 = vor.u32 %v3485_v10, %v2981_v12 }
 0x57c   : > { %1427 = vmatpush.bf16.msrb.mxu3 %v2984_v13 }
 0x581   : > { %v1173_v14 = vpop.f32.mrf.mxu0 }
 0x582   : > { %v2971_v14 = vld [vmem:[#allocation4] sm:$0xf] }
 0x583   : > { %v2972_v18 = vor.u32 %v3484_v15, %v2971_v14 }
 0x5cb   : > { %v1177_v20 = vpop.permute.xlu0 %1176 }
 0x5cc   : > { %v1187_v21 = vsel %vm940_vm4, %v4055_v25, %v1177_v20  ;;  %v3498_v25 = vld [vmem:[#allocation4 + $0x74] sm:$0xf0]  ;;  %v2973_v20 = vld [vmem:[#allocation4 + $0x8] sm:$0xf0] }
 0x5cd   : > { %v3028_v35 = vor.u32 %v3498_v25, %v3027_v33 }
 0x5cf   : > { %1408 = vmatpush.bf16.msra.mxu2 %v3028_v35  ;;  %v3648_v35 = vld [vmem:[%s4331_s8] ss:$0 sm:$0xff] }
 0x5d3   : > { %v1181_v22 = vpop.permute.xlu0 %1180 }
 0x5d4   : > { %v1189_v23 = vsel %vm1188_vm7, %v1187_v21, %v1181_v22  ;;  %v1185_v24 = vpop.permute.xlu2 %1184  ;;  %v2976_v21 = vor.u32 %v3483_v17, %v2973_v20  ;;  %v3506_v22 = vld [vmem:[#allocation6 + $0x38] sm:$0xff] }
 0x5d5   : > { %v1191_v26 = vsel %vm1190_vm8, %v1189_v23, %v1185_v24  ;;  %v3514_v23 = vld [vmem:[#allocation6 + $0x78] sm:$0xff]  ;;  %1586 = vmatpush.bf16.msra.mxu0 %v3506_v22 }
 0x5d6   : > { %v1192_v27 = vpack.c.bf16 %v1191_v26, %v1191_v26  ;;  %1428 = vmatpush.bf16.msrb.mxu3 %v2976_v21  ;;  %1599 = vmatpush.bf16.msrb.mxu1 %v3514_v23  ;;  %v3650_v21 = vld [vmem:[%s4336_s13] ss:$0 sm:$0xff] }
 0x5d8   : > { %1269 = vmatmul.bf16.vlgmr.msra.gmra.mxu1 %v1192_v27  ;;  %v3505_v27 = vld [vmem:[#allocation6 + $0x30] sm:$0xff] }
 0x5d9   : > { %1587 = vmatpush.bf16.msra.mxu0 %v3505_v27 }
 0x655   : > { %v1270_v29 = vpop.f32.mrf.mxu1 }
 0x656   : > { %v1271_v30 = vadd.f32 %v3647_v28, %v1270_v29  ;;  %v3513_v28 = vld [vmem:[#allocation6 + $0x70] sm:$0xff] }
 0x657   : > { %1600 = vmatpush.bf16.msrb.mxu1 %v3513_v28 }
 0x658   : > { %v1274_v31 = vadd.f32 %v1271_v30, %v4014_v36  ;;  %v3019_v36 = vld [vmem:[#allocation4 + $0x60] sm:$0xf] }
 0x659   : > { %v3020_v44 = vor.u32 %v3496_v42, %v3019_v36  ;;  %v3504_v42 = vld [vmem:[#allocation6 + $0x28] sm:$0xff] }
 0x65a   : > { %1277 = vadd.xlane.f32.xlu0 %v1274_v31  ;;  %1588 = vmatpush.bf16.msra.mxu0 %v3504_v42  ;;  %v3172_v42 = vld [vmem:[#allocation2 + $0x150] sm:$0xf] }
 0x65b   : > { %1409 = vmatpush.bf16.msra.mxu2 %v3020_v44  ;;  %1601 = vmatpush.bf16.msrb.mxu1 %v3512_v43  ;;  %v3503_v44 = vld [vmem:[#allocation6 + $0x20] sm:$0xff]  ;;  %v3534_v43 = vld [vmem:[#allocation2 + $0x158] sm:$0xf0] }
 0x65d   : > { %v1272_v32 = vpop.f32.mrf.mxu1 }
 0x65e   : > { %1589 = vmatpush.bf16.msra.mxu0 %v3503_v44  ;;  %v3533_v44 = vld [vmem:[#allocation2 + $0x154] sm:$0xf] }
 0x65f   : > { %1410 = vmatpush.bf16.msra.mxu2 %v3012_v50  ;;  %1602 = vmatpush.bf16.msrb.mxu1 %v3511_v45  ;;  %v3508_v50 = vld [vmem:[#allocation6 + $0x48] sm:$0xff]  ;;  %v3173_v45 = vor.u32 %v3534_v43, %v3172_v42 }
 0x663   : > { %1411 = vmatpush.bf16.msra.mxu2 %v3004_v57  ;;  %1603 = vmatpush.bf16.msrb.mxu1 %v3510_v46  ;;  %v3180_v46 = vld [vmem:[#allocation2 + $0x158] sm:$0xf] }
 0x667   : > { %1412 = vmatpush.bf16.msra.mxu2 %v2996_v51  ;;  %1604 = vmatpush.bf16.msrb.mxu1 %v3509_v48 }
 0x66b   : > { %1413 = vmatpush.bf16.msra.mxu2 %v2988_v5  ;;  %1605 = vmatpush.bf16.msrb.mxu1 %v3508_v50  ;;  %v3160_v50 = vld [vmem:[#allocation2 + $0x138] sm:$0xf] }
 0x66f   : > { %1414 = vmatpush.bf16.msra.mxu2 %v2980_v11  ;;  %1606 = vmatpush.bf16.msrb.mxu1 %v3507_v53  ;;  %v3530_v53 = vld [vmem:[#allocation2 + $0x13c] sm:$0xf] }
 0x673   : > { %1415 = vmatpush.bf16.msra.mxu2 %v2972_v18 }
 0x6cd   : > { %v1278_v39 = vpop.xlane.xlu0 %1277 }
 0x6ce   : > { %v1279_v40 = vmul.f32 %v1278_v39, %v3999_v16  ;;  %v3649_v39 = vld [vmem:[%s4332_s9] ss:$0 sm:$0xff] }
 0x6d0   : > { %v4109_v19 = vsub.f32 %v1274_v31, %v1279_v40 }
 0x6d2   : > { %v1281_v41 = vmul.f32 %v4109_v19, %v4109_v19 }
 0x6d4   : > { %1282 = vadd.xlane.f32.xlu1 %v1281_v41 }
 0x747   : > { %v1283_v24 = vpop.xlane.xlu1 %1282 }
 0x748   : > { %v1284_v26 = vmul.f32 %v1283_v24, %v3999_v16 }
 0x74a   : > { %v1285_v29 = vadd.f32 1e-05, %v1284_v26 }
 0x74c   : > { %3681 = vrsqrt.f32 %v1285_v29  ;;  %vm1292_vm10 = vweird.f32 %v1285_v29 }
 0x752   : > { %v3682_v30 = vpop.eup %3681 }
 0x753   : > { %v1287_v31 = vmul.f32 %v3682_v30, %v1285_v29  ;;  %vm1293_vm9 = vweird.f32 %v3682_v30 }
 0x754   : > { %vm1294_vm11 = vmor %vm1292_vm10, %vm1293_vm9 }
 0x755   : > { %v1288_v32 = vmul.f32 %v3682_v30, %v1287_v31  ;;  %v3537_v31 = vld [vmem:[#allocation2 + $0x170] sm:$0xf0] }
 0x757   : > { %v1289_v33 = vmul.f32 0.5, %v1288_v32  ;;  %v3536_v32 = vld [vmem:[#allocation2 + $0x16c] sm:$0xf] }
 0x759   : > { %v1290_v25 = vsub.f32 1.5, %v1289_v33 }
 0x75b   : > { %v1291_v34 = vmul.f32 %v3682_v30, %v1290_v25  ;;  %v3186_v25 = vld [vmem:[#allocation2 + $0x174] sm:$0xf0] }
 0x75d   : > { %v1295_v37 = vsel %vm1294_vm11, %v3682_v30, %v1291_v34  ;;  %v3184_v30 = vld [vmem:[#allocation2 + $0x168] sm:$0xf]  ;;  %v3192_v34 = vld [vmem:[#allocation2 + $0x170] sm:$0xf] }
 0x75e   : > { %v1296_v38 = vmul.f32 %v1295_v37, %v4109_v19  ;;  %v3502_v19 = vld [vmem:[#allocation6 + $0x18] sm:$0xff]  ;;  %v3185_v33 = vor.u32 %v3537_v31, %v3184_v30  ;;  %v3189_v37 = vor.u32 %v3536_v32, %v3186_v25  ;;  %v3114_v30 = vld [vmem:[#allocation2 + $0xe4] sm:$0xf0]  ;;  %v3120_v31 = vld [vmem:[#allocation2 + $0xe0] sm:$0xf] }
 0x75f   : > { %1590 = vmatpush.bf16.msra.mxu0 %v3502_v19  ;;  %v3174_v19 = vld [vmem:[#allocation2 + $0x15c] sm:$0xf0]  ;;  %v3520_v32 = vld [vmem:[#allocation2 + $0xe8] sm:$0xf0] }
 0x760   : > { %v1300_v40 = vmul.f32 %v3648_v35, %v1296_v38  ;;  %v3538_v35 = vld [vmem:[#allocation2 + $0x178] sm:$0xf0]  ;;  %1814 = vmatpush.bf16.msrb.mxu2 %v3185_v33  ;;  %1827 = vmatpush.bf16.msra.mxu3 %v3189_v37  ;;  %v3177_v48 = vor.u32 %v3533_v44, %v3174_v19  ;;  %v3121_v25 = vor.u32 %v3520_v32, %v3120_v31  ;;  %v3515_v37 = vld [vmem:[#allocation2 + $0xc4] sm:$0xf] }
 0x761   : > { %v3193_v38 = vor.u32 %v3538_v35, %v3192_v34  ;;  %v3100_v34 = vld [vmem:[#allocation2 + $0xc0] sm:$0xf]  ;;  %v3516_v35 = vld [vmem:[#allocation2 + $0xc8] sm:$0xf0] }
 0x762   : > { %v4121_v41 = vadd.f32 %v3649_v39, %v1300_v40 }
 0x763   : > { %1591 = vmatpush.bf16.msra.mxu0 %v3501_v47  ;;  %v3535_v47 = vld [vmem:[#allocation2 + $0x160] sm:$0xf0] }
 0x764   : > { %v1305_v36 = vpack.c.bf16 %v4121_v41, %v4121_v41  ;;  %1815 = vmatpush.bf16.msrb.mxu2 %v3173_v45  ;;  %1828 = vmatpush.bf16.msra.mxu3 %v3177_v48 }
 0x766   : > { %1416 = vmatmul.bf16.vlgmr.msra.gmra.mxu2 %v1305_v36  ;;  %1429 = vmatmul.bf16.vlgmr.msrb.gmra.mxu3 %v1305_v36 }
 0x767   : > { %1592 = vmatpush.bf16.msra.mxu0 %v3500_v49  ;;  %v3181_v49 = vor.u32 %v3535_v47, %v3180_v46 }
 0x76b   : > { %1593 = vmatpush.bf16.msra.mxu0 %v3499_v52  ;;  %v3531_v52 = vld [vmem:[#allocation2 + $0x140] sm:$0xf0] }
 0x76c   : > { %v3161_v54 = vor.u32 %v3531_v52, %v3160_v50 }
 0x76e   : > { %1816 = vmatpush.bf16.msrb.mxu2 %v3161_v54 }
 0x76f   : > { %1840 = vmatpush.bf16.msrb.mxu0 %v3193_v38  ;;  %v3101_v38 = vor.u32 %v3516_v35, %v3100_v34 }
 0x773   : > { %1841 = vmatpush.bf16.msrb.mxu0 %v3181_v49 }
 0x7e9   : > { %v1417_v57 = vpop.f32.mrf.mxu2  ;;  %v1430_v58 = vpop.f32.mrf.mxu3 }
 0x7ea   : > { %v1418_v59 = vadd.f32 %v1417_v57, %v1324_v55  ;;  %v1431_v60 = vadd.f32 %v1430_v58, %v1325_v56  ;;  %v3162_v55 = vld [vmem:[#allocation2 + $0x144] sm:$0xf0]  ;;  %v3168_v56 = vld [vmem:[#allocation2 + $0x140] sm:$0xf]  ;;  %v3532_v57 = vld [vmem:[#allocation2 + $0x148] sm:$0xf0] }
 0x7eb   : > { %v3165_v58 = vor.u32 %v3530_v53, %v3162_v55  ;;  %v3651_v53 = vld [vmem:[%s4337_s14] ss:$0 sm:$0xff] }
 0x7ec   : > { %v1436_v62 = vmul.f32 0.044715, %v1418_v59  ;;  %v1437_v63 = vmul.f32 0.044715, %v1431_v60  ;;  %v1434_v11 = vmul.f32 0.5, %v1418_v59  ;;  %v1435_v13 = vmul.f32 0.5, %v1431_v60 }
 0x7ed   : > { %1829 = vmatpush.bf16.msra.mxu3 %v3165_v58 }
 0x7ee   : > { %v1438_v51 = vmul.f32 %v1436_v62, %v1418_v59  ;;  %v1439_v0 = vmul.f32 %v1437_v63, %v1431_v60  ;;  %v3528_v62 = vld [vmem:[#allocation2 + $0x128] sm:$0xf0]  ;;  %v3527_v63 = vld [vmem:[#allocation2 + $0x124] sm:$0xf] }
 0x7f0   : > { %v1440_v1 = vmul.f32 %v1438_v51, %v1418_v59  ;;  %v1441_v2 = vmul.f32 %v1439_v0, %v1431_v60  ;;  %v3150_v0 = vld [vmem:[#allocation2 + $0x12c] sm:$0xf0] }
 0x7f1   : > { %v1419_v3 = vpop.f32.mrf.mxu2  ;;  %v1432_v4 = vpop.f32.mrf.mxu3 }
 0x7f2   : > { %v1442_v5 = vadd.f32 %v1440_v1, %v1418_v59  ;;  %v1443_v6 = vadd.f32 %v1441_v2, %v1431_v60  ;;  %v3169_v59 = vor.u32 %v3532_v57, %v3168_v56  ;;  %v3148_v60 = vld [vmem:[#allocation2 + $0x120] sm:$0xf]  ;;  %v3156_v1 = vld [vmem:[#allocation2 + $0x128] sm:$0xf]  ;;  %v3529_v2 = vld [vmem:[#allocation2 + $0x130] sm:$0xf0]  ;;  %v3153_v3 = vor.u32 %v3527_v63, %v3150_v0 }
 0x7f3   : > { %v3149_v51 = vor.u32 %v3528_v62, %v3148_v60  ;;  %v3157_v4 = vor.u32 %v3529_v2, %v3156_v1  ;;  %v3652_v56 = vld [vmem:[%s4338_s15] ss:$0 sm:$0xff]  ;;  %v3097_v60 = vld [vmem:[%s4328_s5 + $0x3] sm:$0x7] }
 0x7f4   : > { %v1444_v7 = vmul.f32 0.7978846, %v1442_v5  ;;  %v1445_v8 = vmul.f32 0.7978846, %v1443_v6  ;;  %1842 = vmatpush.bf16.msrb.mxu0 %v3169_v59  ;;  %1830 = vmatpush.bf16.msra.mxu3 %v3153_v3  ;;  %v3136_v5 = vld [vmem:[#allocation2 + $0x108] sm:$0xf] }
 0x7f5   : > { %1817 = vmatpush.bf16.msrb.mxu2 %v3149_v51  ;;  %v3525_v6 = vld [vmem:[#allocation2 + $0x110] sm:$0xf0]  ;;  %v1682_v62 = vperm.slane %v3097_v60, 2  ;;  %v1680_v51 = vperm.slane %v3097_v60, 0  ;;  %v1681_v0 = vperm.slane %v3097_v60, 1 }
 0x7f6   : > { %3683 = vtanh.f32 %v1444_v7  ;;  %v3524_v7 = vld [vmem:[#allocation2 + $0x10c] sm:$0xf] }
 0x7f7   : > { %3685 = vtanh.f32 %v1445_v8  ;;  %v3137_v8 = vor.u32 %v3525_v6, %v3136_v5 }
 0x7f8   : > { %1843 = vmatpush.bf16.msrb.mxu0 %v3157_v4 }
 0x7f9   : > { %1818 = vmatpush.bf16.msrb.mxu2 %v3137_v8 }
 0x7fc   : > { %v3684_v9 = vpop.eup %3683 }
 0x7fd   : > { %v3686_v10 = vpop.eup %3685  ;;  %v1448_v12 = vadd.f32 1.0, %v3684_v9  ;;  %v3138_v9 = vld [vmem:[#allocation2 + $0x114] sm:$0xf0] }
 0x7fe   : > { %v1449_v14 = vadd.f32 1.0, %v3686_v10  ;;  %v3144_v10 = vld [vmem:[#allocation2 + $0x110] sm:$0xf] }
 0x7ff   : > { %v1450_v15 = vmul.f32 %v1448_v12, %v1434_v11  ;;  %v3526_v11 = vld [vmem:[#allocation2 + $0x118] sm:$0xf0]  ;;  %v3141_v12 = vor.u32 %v3524_v7, %v3138_v9 }
 0x800   : > { %v1451_v17 = vmul.f32 %v1449_v14, %v1435_v13  ;;  %v3145_v13 = vor.u32 %v3526_v11, %v3144_v10  ;;  %v3124_v14 = vld [vmem:[#allocation2 + $0xf0] sm:$0xf] }
 0x801   : > { %v1452_v18 = vpack.c.bf16 %v1450_v15, %v1450_v15  ;;  %1831 = vmatpush.bf16.msra.mxu3 %v3141_v12  ;;  %v3522_v15 = vld [vmem:[#allocation2 + $0xf8] sm:$0xf0] }
 0x802   : > { %v1453_v20 = vpack.c.bf16 %v1451_v17, %v1451_v17  ;;  %1844 = vmatpush.bf16.msrb.mxu0 %v3145_v13  ;;  %v3521_v17 = vld [vmem:[#allocation2 + $0xf4] sm:$0xf] }
 0x803   : > { %1594 = vmatmul.bf16.vlgmr.msra.gmra.mxu0 %v1452_v18  ;;  %v3125_v18 = vor.u32 %v3522_v15, %v3124_v14 }
 0x804   : > { %1607 = vmatmul.bf16.vlgmr.msrb.gmra.mxu1 %v1453_v20  ;;  %v3126_v20 = vld [vmem:[#allocation2 + $0xfc] sm:$0xf0] }
 0x805   : > { %1819 = vmatpush.bf16.msrb.mxu2 %v3125_v18 }
 0x880   : > { %v1595_v22 = vpop.f32.mrf.mxu0 }
 0x881   : > { %v1596_v23 = vadd.f32 %v3650_v21, %v1595_v22  ;;  %v1608_v24 = vpop.f32.mrf.mxu1  ;;  %v3132_v21 = vld [vmem:[#allocation2 + $0xf8] sm:$0xf]  ;;  %v3523_v22 = vld [vmem:[#allocation2 + $0x100] sm:$0xf0] }
 0x883   : > { %v1609_v26 = vadd.f32 %v1608_v24, %v1596_v23  ;;  %v3129_v23 = vor.u32 %v3521_v17, %v3126_v20  ;;  %v3133_v24 = vor.u32 %v3523_v22, %v3132_v21 }
 0x885   : > { %v1612_v27 = vadd.f32 %v1609_v26, %v4121_v41  ;;  %1832 = vmatpush.bf16.msra.mxu3 %v3129_v23  ;;  %1845 = vmatpush.bf16.msrb.mxu0 %v3133_v24  ;;  %v3112_v26 = vld [vmem:[#allocation2 + $0xd8] sm:$0xf] }
 0x887   : > { %1615 = vadd.xlane.f32.xlu2 %v1612_v27 }
 0x888   : > { %v1597_v28 = vpop.f32.mrf.mxu0 }
 0x889   : > { %v1610_v29 = vpop.f32.mrf.mxu1  ;;  %v3518_v28 = vld [vmem:[#allocation2 + $0xdc] sm:$0xf]  ;;  %1846 = vmatpush.bf16.msrb.mxu0 %v3121_v25 }
 0x88a   : > { %v3117_v33 = vor.u32 %v3518_v28, %v3114_v30 }
 0x88c   : > { %1833 = vmatpush.bf16.msra.mxu3 %v3117_v33 }
 0x8fa   : > { %v1616_v39 = vpop.xlane.xlu2 %1615 }
 0x8fb   : > { %v1617_v40 = vmul.f32 %v1616_v39, %v3999_v16  ;;  %v3102_v39 = vld [vmem:[#allocation2 + $0xcc] sm:$0xf0] }
 0x8fc   : > { %v3105_v42 = vor.u32 %v3515_v37, %v3102_v39 }
 0x8fd   : > { %v4133_v36 = vsub.f32 %v1612_v27, %v1617_v40  ;;  %v3519_v27 = vld [vmem:[#allocation2 + $0xe0] sm:$0xf0]  ;;  %v3108_v40 = vld [vmem:[#allocation2 + $0xc8] sm:$0xf] }
 0x8fe   : > { %v3113_v29 = vor.u32 %v3519_v27, %v3112_v26  ;;  %1834 = vmatpush.bf16.msra.mxu3 %v3105_v42 }
 0x8ff   : > { %v1619_v41 = vmul.f32 %v4133_v36, %v4133_v36 }
 0x900   : > { %1820 = vmatpush.bf16.msrb.mxu2 %v3113_v29 }
 0x901   : > { %1620 = vadd.xlane.f32.xlu0 %v1619_v41  ;;  %v3517_v41 = vld [vmem:[#allocation2 + $0xd0] sm:$0xf0] }
 0x902   : > { %v3109_v43 = vor.u32 %v3517_v41, %v3108_v40 }
 0x904   : > { %1821 = vmatpush.bf16.msrb.mxu2 %v3101_v38  ;;  %1847 = vmatpush.bf16.msrb.mxu0 %v3109_v43 }
 0x974   : > { %v1621_v44 = vpop.xlane.xlu0 %1620 }
 0x975   : > { %v1622_v45 = vmul.f32 %v1621_v44, %v3999_v16 }
 0x977   : > { %v1623_v19 = vadd.f32 1e-05, %v1622_v45 }
 0x979   : > { %3687 = vrsqrt.f32 %v1623_v19  ;;  %vm1630_vm13 = vweird.f32 %v1623_v19 }
 0x97f   : > { %v3688_v46 = vpop.eup %3687 }
 0x980   : > { %v1625_v47 = vmul.f32 %v3688_v46, %v1623_v19  ;;  %vm1631_vm12 = vweird.f32 %v3688_v46 }
 0x981   : > { %vm1632_vm14 = vmor %vm1630_vm13, %vm1631_vm12 }
 0x982   : > { %v1626_v48 = vmul.f32 %v3688_v46, %v1625_v47 }
 0x984   : > { %v1627_v49 = vmul.f32 0.5, %v1626_v48 }
 0x986   : > { %v1628_v50 = vsub.f32 1.5, %v1627_v49 }
 0x988   : > { %v1629_v52 = vmul.f32 %v3688_v46, %v1628_v50 }
 0x98a   : > { %v1633_v54 = vsel %vm1632_vm14, %v3688_v46, %v1629_v52 }
 0x98b   : > { %v1634_v55 = vmul.f32 %v1633_v54, %v4133_v36 }
 0x98d   : > { %v1638_v57 = vmul.f32 %v3651_v53, %v1634_v55 }
 0x98f   : > { %v4145_v58 = vadd.f32 %v3652_v56, %v1638_v57 }
 0x991   : > { %v1643_v59 = vpack.c.bf16 %v4145_v58, %v4145_v58 }
 0x993   : > { %1822 = vmatmul.bf16.vlgmr.msrb.gmra.mxu2 %v1643_v59  ;;  %1835 = vmatmul.bf16.vlgmr.msra.gmra.mxu3 %v1643_v59 }
 0x994   : > { %1848 = vmatmul.bf16.vlgmr.msrb.gmra.mxu0 %v1643_v59 }
 0xa11   : > { %v1849_v63 = vpop.f32.mrf.mxu0 }
 0xa12   : > { %v1850_v36 = vadd.f32 %v1849_v63, %v1682_v62 }
 0xa14   : > { %v4152_v1 = vpack.c.bf16 %v1850_v36, %v1850_v36 }
 0xa16   : > { %v1823_v2 = vpop.f32.mrf.mxu2  ;;  %v1836_v3 = vpop.f32.mrf.mxu3  ;;  %v1893_v4 = vsel %vm981_vm5, %v4152_v1, 0 }
 0xa17   : > { %v1824_v5 = vadd.f32 %v1823_v2, %v1680_v51  ;;  %v1837_v6 = vadd.f32 %v1836_v3, %v1681_v0  ;;  %1902 = vmatpush.bf16.msra.mxu2 %v1893_v4 }
 0xa19   : > { %v1853_v7 = vpack.c.bf16 %v1824_v5, %v1824_v5  ;;  %v1854_v8 = vpack.c.bf16 %v1837_v6, %v1837_v6  ;;  %v1851_v9 = vpop.f32.mrf.mxu0 }
 0xa1b   : > { %1971 = vrot.lane.b32.xlu0 %v1854_v8, %s3829_s4  ;;  %1912 = vrot.lane.b32.xlu1 %v1854_v8, %s3830_s17  ;;  %v1860_v10 = vsel %vm940_vm4, %v1854_v8, 0 }
 0xa1c   : > { %1909 = vrot.lane.b32.xlu2 %v1853_v7, %s3830_s17  ;;  %1869 = vmatpush.bf16.xpose.msra.mxu1 %v1860_v10 }
 0xa1e   : > { %v1825_v11 = vpop.f32.mrf.mxu2  ;;  %v1838_v12 = vpop.f32.mrf.mxu3 }
 0xa23   : > { %2029 = vrot.lane.b32.xlu1 %v1854_v8, %s3831_s19  ;;  %1969 = vrot.lane.b32.xlu0 %v1853_v7, %s3829_s4 }
 0xa24   : > { %2027 = vrot.lane.b32.xlu2 %v1853_v7, %s3831_s19  ;;  %3194 = vmatmul.msk.bf16.vlgmr.msra.gmra.mxu1 %vm940_vm4, %v1853_v7 }
 0xa76   : > { %v1910_v18 = vpop.permute.xlu2 %1909 }
 0xa7e   : > { %v2028_v27 = vpop.permute.xlu2 %2027 }
 0xa8d   : > { %v1972_v13 = vpop.permute.xlu0 %1971  ;;  %v1913_v14 = vpop.permute.xlu1 %1912 }
 0xa8e   : > { %v1977_v15 = vsel %vm940_vm4, %v1972_v13, 0  ;;  %v1918_v17 = vsel %vm940_vm4, %v1913_v14, 0 }
 0xa8f   : > { %1927 = vmatpush.bf16.xpose.msrb.mxu3 %v1918_v17  ;;  %1986 = vmatpush.bf16.xpose.msrb.mxu1 %v1977_v15 }
 0xa95   : > { %v2030_v20 = vpop.permute.xlu1 %2029  ;;  %v1970_v21 = vpop.permute.xlu0 %1969 }
 0xa96   : > { %v2035_v22 = vsel %vm940_vm4, %v2030_v20, 0  ;;  %3196 = vmatmul.msk.bf16.vlgmr.msrb.gmra.mxu3 %vm940_vm4, %v1910_v18  ;;  %3198 = vmatmul.msk.bf16.vlgmr.msrb.gmra.mxu1 %vm940_vm4, %v1970_v21 }
 0xa97   : > { %2044 = vmatpush.bf16.xpose.msra.mxu3 %v2035_v22 }
 0xaa1   : > { %v1871_v23 = vpop.f32.mrf.mxu1 }
 0xaa2   : > { %v1875_v24 = vmul.f32 0.17677669, %v1871_v23 }
 0xaa4   : > { %v1876_v26 = vadd.f32 %v4040_v61, %v1875_v24 }
 0xaa6   : > { %3200 = vmatmul.msk.bf16.vlgmr.msra.gmra.mxu3 %vm940_vm4, %v2028_v27  ;;  %v1877_v28 = vsel %vm965_vm6, %v1876_v26, -inf  ;;  %v3546_v27 = vld [vmem:[%s4329_s6 + $0x78] sm:$0xff] }
 0xaa7   : > { %1878 = vmax.xlane.f32.xlu1 %v1877_v28  ;;  %2171 = vmatpush.bf16.msra.mxu1 %v3546_v27  ;;  %v3545_v28 = vld [vmem:[%s4329_s6 + $0x70] sm:$0xff] }
 0xaa9   : > { %v1873_v29 = vpop.f32.mrf.mxu1 }
 0xaaa   : > { %v3544_v29 = vld [vmem:[%s4329_s6 + $0x68] sm:$0xff] }
 0xaab   : > { %2172 = vmatpush.bf16.msra.mxu1 %v3545_v28  ;;  %v3274_v28 = vld [vmem:[#allocation4 + $0xa8] sm:$0xf0] }
 0xaaf   : > { %2173 = vmatpush.bf16.msra.mxu1 %v3544_v29 }
 0xb13   : > { %v1988_v30 = vpop.f32.mrf.mxu1 }
 0xb14   : > { %v1992_v31 = vmul.f32 0.17677669, %v1988_v30 }
 0xb16   : > { %v1993_v32 = vadd.f32 %v4040_v61, %v1992_v31 }
 0xb18   : > { %v1994_v33 = vsel %vm965_vm6, %v1993_v32, -inf }
 0xb19   : > { %v1929_v25 = vpop.f32.mrf.mxu3  ;;  %1995 = vmax.xlane.f32.xlu2 %v1994_v33 }
 0xb1a   : > { %v1933_v34 = vmul.f32 0.17677669, %v1929_v25  ;;  %v1879_v35 = vpop.xlane.xlu1 %1878 }
 0xb1b   : > { %v1880_v37 = vsub.f32 %v1876_v26, %v1879_v35  ;;  %v1990_v38 = vpop.f32.mrf.mxu1  ;;  %v3543_v35 = vld [vmem:[%s4329_s6 + $0x60] sm:$0xff] }
 0xb1c   : > { %v1934_v39 = vadd.f32 %v4040_v61, %v1933_v34  ;;  %2174 = vmatpush.bf16.msra.mxu1 %v3543_v35  ;;  %v3541_v38 = vld [vmem:[%s4329_s6 + $0x50] sm:$0xff]  ;;  %v3548_v35 = vld [vmem:[#allocation4 + $0x84] sm:$0xf0] }
 0xb1d   : > { %v1881_v40 = vmul.f32 1.442695, %v1880_v37  ;;  %v3542_v37 = vld [vmem:[%s4329_s6 + $0x58] sm:$0xff] }
 0xb1e   : > { %v1935_v41 = vsel %vm965_vm6, %v1934_v39, -inf }
 0xb1f   : > { %3689 = vpow2.f32 %v1881_v40  ;;  %1936 = vmax.xlane.f32.xlu0 %v1935_v41  ;;  %v3539_v40 = vld [vmem:[%s4329_s6 + $0x40] sm:$0xff] }
 0xb20   : > { %2175 = vmatpush.bf16.msra.mxu1 %v3542_v37 }
 0xb21   : > { %v1931_v42 = vpop.f32.mrf.mxu3 }
 0xb24   : > { %2176 = vmatpush.bf16.msra.mxu1 %v3541_v38  ;;  %v3547_v38 = vld [vmem:[#allocation4 + $0x84] sm:$0xf] }
 0xb25   : > { %v3690_v43 = vpop.eup %3689 }
 0xb26   : > { %v1883_v44 = vsel %vm965_vm6, %v3690_v43, 0.0 }
 0xb27   : > { %1884 = vadd.xlane.f32.xlu0 %v1883_v44 }
 0xb29   : > { %v2046_v45 = vpop.f32.mrf.mxu3 }
 0xb2a   : > { %v2050_v19 = vmul.f32 0.17677669, %v2046_v45 }
 0xb2c   : > { %v2051_v46 = vadd.f32 %v4040_v61, %v2050_v19 }
 0xb2e   : > { %v2052_v47 = vsel %vm965_vm6, %v2051_v46, -inf }
 0xb2f   : > { %2053 = vmax.xlane.f32.xlu1 %v2052_v47  ;;  %v3653_v47 = vld [vmem:[%s4330_s7 + $0x1] ss:$0 sm:$0xff] }
 0xb31   : > { %v2048_v48 = vpop.f32.mrf.mxu3 }
 0xb48   : > { %1948 = vrot.lane.b32.xlu1 %v4152_v1, %s3830_s17 }
 0xb8c   : > { %v1996_v49 = vpop.xlane.xlu2 %1995 }
 0xb8d   : > { %v1997_v50 = vsub.f32 %v1993_v32, %v1996_v49 }
 0xb8f   : > { %v1998_v52 = vmul.f32 1.442695, %v1997_v50 }
 0xb91   : > { %3691 = vpow2.f32 %v1998_v52 }
 0xb92   : > { %v1937_v53 = vpop.xlane.xlu0 %1936 }
 0xb93   : > { %v1938_v54 = vsub.f32 %v1934_v39, %v1937_v53  ;;  %v3540_v39 = vld [vmem:[%s4329_s6 + $0x48] sm:$0xff]  ;;  %v3312_v53 = vld [vmem:[#allocation4 + $0xf0] sm:$0xf] }
 0xb94   : > { %2177 = vmatpush.bf16.msra.mxu1 %v3540_v39  ;;  %v3258_v39 = vld [vmem:[#allocation4 + $0x88] sm:$0xf0] }
 0xb95   : > { %v1939_v55 = vmul.f32 1.442695, %v1938_v54  ;;  %v3562_v54 = vld [vmem:[#allocation4 + $0xf4] sm:$0xf0] }
 0xb97   : > { %v3692_v56 = vpop.eup %3691  ;;  %3693 = vpow2.f32 %v1939_v55  ;;  %v3561_v55 = vld [vmem:[#allocation4 + $0xf4] sm:$0xf] }
 0xb98   : > { %v2000_v57 = vsel %vm965_vm6, %v3692_v56, 0.0  ;;  %2178 = vmatpush.bf16.msra.mxu1 %v3539_v40 }
 0xb99   : > { %2001 = vadd.xlane.f32.xlu0 %v2000_v57  ;;  %v3314_v57 = vld [vmem:[#allocation4 + $0xf8] sm:$0xf0] }
 0xb9a   : > { %v1885_v61 = vpop.xlane.xlu0 %1884 }
 0xb9b   : > { %3695 = vrcp.f32 %v1885_v61  ;;  %v3317_v61 = vor.u32 %v3561_v55, %v3314_v57  ;;  %v3654_v55 = vld [vmem:[%s4331_s8 + $0x1] ss:$0 sm:$0xff] }
 0xb9d   : > { %v3694_v59 = vpop.eup %3693  ;;  %2335 = vmatpush.bf16.msrb.mxu3 %v3317_v61  ;;  %v3655_v61 = vld [vmem:[%s4332_s9 + $0x1] ss:$0 sm:$0xff] }
 0xb9e   : > { %v1941_v60 = vsel %vm965_vm6, %v3694_v59, 0.0 }
 0xb9f   : > { %1942 = vadd.xlane.f32.xlu2 %v1941_v60 }
 0xba1   : > { %v3696_v62 = vpop.eup %3695 }
 0xba2   : > { %v1887_v63 = vmul.f32 %v3696_v62, %v3690_v43  ;;  %v2054_v36 = vpop.xlane.xlu1 %2053 }
 0xba3   : > { %v2055_v51 = vsub.f32 %v2051_v46, %v2054_v36  ;;  %v3560_v36 = vld [vmem:[#allocation4 + $0xe4] sm:$0xf0] }
 0xba4   : > { %v1888_v0 = vpack.c.bf16 %v1887_v63, %v1887_v63 }
 0xba5   : > { %v2056_v2 = vmul.f32 1.442695, %v2055_v51  ;;  %v3559_v51 = vld [vmem:[#allocation4 + $0xe4] sm:$0xf] }
 0xba6   : > { %3195 = vmatmul.msk.bf16.vlgmr.msra.gmra.mxu2 %vm965_vm6, %v1888_v0 }
 0xba7   : > { %3697 = vpow2.f32 %v2056_v2  ;;  %v3306_v2 = vld [vmem:[#allocation4 + $0xe8] sm:$0xf0] }
 0xbad   : > { %v3698_v3 = vpop.eup %3697  ;;  %2006 = vrot.lane.b32.xlu0 %v4152_v1, %s3829_s4 }
 0xbae   : > { %v2058_v4 = vsel %vm965_vm6, %v3698_v3, 0.0 }
 0xbaf   : > { %2059 = vadd.xlane.f32.xlu2 %v2058_v4  ;;  %v3296_v4 = vld [vmem:[#allocation4 + $0xd0] sm:$0xf] }
 0xbba   : > { %v1949_v5 = vpop.permute.xlu1 %1948 }
 0xbbb   : > { %v1954_v6 = vsel %vm981_vm5, %v1949_v5, 0  ;;  %v3558_v5 = vld [vmem:[#allocation4 + $0xd4] sm:$0xf0] }
 0xbbc   : > { %1963 = vmatpush.bf16.msra.mxu0 %v1954_v6  ;;  %v3557_v6 = vld [vmem:[#allocation4 + $0xd4] sm:$0xf] }
 0xbc7   : > { %2064 = vrot.lane.b32.xlu2 %v4152_v1, %s3831_s19 }
 0xc0c   : > { %v2002_v7 = vpop.xlane.xlu0 %2001 }
 0xc12   : > { %v1943_v8 = vpop.xlane.xlu2 %1942 }
 0xc13   : > { %3699 = vrcp.f32 %v1943_v8  ;;  %v3298_v8 = vld [vmem:[#allocation4 + $0xd8] sm:$0xf0] }
 0xc14   : > { %3701 = vrcp.f32 %v2002_v7  ;;  %v3297_v7 = vor.u32 %v3558_v5, %v3296_v4  ;;  %v3573_v4 = vld [vmem:[#allocation6 + $0xd0] sm:$0xff]  ;;  %v3564_v5 = vld [vmem:[#allocation6 + $0x88] sm:$0xff] }
 0xc19   : > { %v3700_v9 = vpop.eup %3699 }
 0xc1a   : > { %v1945_v10 = vmul.f32 %v3700_v9, %v3694_v59  ;;  %v3702_v11 = vpop.eup %3701  ;;  %v3301_v9 = vor.u32 %v3557_v6, %v3298_v8  ;;  %v3572_v6 = vld [vmem:[#allocation6 + $0xc8] sm:$0xff]  ;;  %v3571_v8 = vld [vmem:[#allocation6 + $0xc0] sm:$0xff] }
 0xc1b   : > { %v2004_v13 = vmul.f32 %v3702_v11, %v3692_v56  ;;  %v3313_v56 = vor.u32 %v3562_v54, %v3312_v53  ;;  %v3556_v11 = vld [vmem:[#allocation4 + $0xc4] sm:$0xf0] }
 0xc1c   : > { %v1946_v12 = vpack.c.bf16 %v1945_v10, %v1945_v10  ;;  %v3288_v10 = vld [vmem:[#allocation4 + $0xc0] sm:$0xf] }
 0xc1d   : > { %v2005_v17 = vpack.c.bf16 %v2004_v13, %v2004_v13  ;;  %v3289_v13 = vor.u32 %v3556_v11, %v3288_v10 }
 0xc1e   : > { %3197 = vmatmul.msk.bf16.vlgmr.msra.gmra.mxu0 %vm965_vm6, %v1946_v12  ;;  %v3555_v12 = vld [vmem:[#allocation4 + $0xc4] sm:$0xf] }
 0xc1f   : > { %v2007_v14 = vpop.permute.xlu0 %2006 }
 0xc20   : > { %v2012_v15 = vsel %vm981_vm5, %v2007_v14, 0  ;;  %v3290_v14 = vld [vmem:[#allocation4 + $0xc8] sm:$0xf0] }
 0xc21   : > { %2021 = vmatpush.bf16.msrb.mxu2 %v2012_v15  ;;  %v3293_v15 = vor.u32 %v3555_v12, %v3290_v14 }
 0xc22   : > { %v2060_v18 = vpop.xlane.xlu2 %2059 }
 0xc23   : > { %3703 = vrcp.f32 %v2060_v18  ;;  %v3554_v18 = vld [vmem:[#allocation4 + $0xb4] sm:$0xf0] }
 0xc24   : > { %3199 = vmatmul.msk.bf16.vlgmr.msrb.gmra.mxu2 %vm965_vm6, %v2005_v17  ;;  %v3280_v17 = vld [vmem:[#allocation4 + $0xb0] sm:$0xf] }
 0xc25   : > { %2322 = vmatpush.bf16.msra.mxu2 %v3313_v56 }
 0xc29   : > { %v3704_v1 = vpop.eup %3703  ;;  %v1904_v20 = vpop.f32.mrf.mxu2 }
 0xc2a   : > { %v2062_v21 = vmul.f32 %v3704_v1, %v3698_v3  ;;  %v2065_v22 = vpop.permute.xlu2 %2064  ;;  %v3309_v3 = vor.u32 %v3559_v51, %v3306_v2  ;;  %v3553_v1 = vld [vmem:[#allocation4 + $0xb4] sm:$0xf]  ;;  %v3567_v51 = vld [vmem:[#allocation6 + $0xa0] sm:$0xff]  ;;  %v3574_v2 = vld [vmem:[#allocation6 + $0xd8] sm:$0xff] }
 0xc2b   : > { %v2070_v23 = vsel %vm981_vm5, %v2065_v22, 0 }
 0xc2c   : > { %v2063_v24 = vpack.c.bf16 %v2062_v21, %v2062_v21  ;;  %2079 = vmatpush.bf16.msrb.mxu0 %v2070_v23  ;;  %2336 = vmatpush.bf16.msrb.mxu3 %v3309_v3  ;;  %v3282_v21 = vld [vmem:[#allocation4 + $0xb8] sm:$0xf0]  ;;  %v3272_v23 = vld [vmem:[#allocation4 + $0xa0] sm:$0xf]  ;;  %v3565_v3 = vld [vmem:[#allocation6 + $0x90] sm:$0xff] }
 0xc2d   : > { %v3285_v22 = vor.u32 %v3553_v1, %v3282_v21 }
 0xc2f   : > { %3201 = vmatmul.msk.bf16.vlgmr.msrb.gmra.mxu0 %vm965_vm6, %v2063_v24  ;;  %v3552_v24 = vld [vmem:[#allocation4 + $0xa4] sm:$0xf0] }
 0xc30   : > { %2337 = vmatpush.bf16.msrb.mxu3 %v3301_v9  ;;  %v3273_v27 = vor.u32 %v3552_v24, %v3272_v23  ;;  %v3253_v9 = vld [vmem:[%s4334_s11 + $0x2] sm:$0x3] }
 0xc31   : > { %v1906_v26 = vpop.f32.mrf.mxu2  ;;  %v2238_v10 = vperm.slane %v3253_v9, 0  ;;  %v2239_v11 = vperm.slane %v3253_v9, 1  ;;  %v3657_v9 = vld [vmem:[%s4337_s14 + $0x1] ss:$0 sm:$0xff] }
 0xc32   : > { %v3551_v26 = vld [vmem:[#allocation4 + $0xa4] sm:$0xf] }
 0xc33   : > { %v3277_v29 = vor.u32 %v3551_v26, %v3274_v28 }
 0xc34   : > { %2338 = vmatpush.bf16.msrb.mxu3 %v3293_v15 }
 0xc38   : > { %2339 = vmatpush.bf16.msrb.mxu3 %v3285_v22 }
 0xc3c   : > { %2340 = vmatpush.bf16.msrb.mxu3 %v3277_v29 }
 0xc9b   : > { %v1965_v30 = vpop.f32.mrf.mxu0 }
 0xc9c   : > { %2086 = vrot.lane.b32.xlu1 %v1965_v30, %s3831_s19  ;;  %v3264_v30 = vld [vmem:[#allocation4 + $0x90] sm:$0xf] }
 0xca3   : > { %v1967_v31 = vpop.f32.mrf.mxu0 }
 0xca4   : > { %v3550_v31 = vld [vmem:[#allocation4 + $0x94] sm:$0xf0] }
 0xca7   : > { %v2023_v32 = vpop.f32.mrf.mxu2 }
 0xca8   : > { %2090 = vrot.lane.b32.xlu0 %v2023_v32, %s3829_s4  ;;  %v3549_v32 = vld [vmem:[#allocation4 + $0x94] sm:$0xf] }
 0xcac   : > { %v2081_v33 = vpop.f32.mrf.mxu0 }
 0xcad   : > { %2094 = vrot.lane.b32.xlu1 %v2081_v33, %s3830_s17  ;;  %v3265_v33 = vor.u32 %v3550_v31, %v3264_v30 }
 0xcaf   : > { %v2025_v25 = vpop.f32.mrf.mxu2 }
 0xcb0   : > { %v3266_v25 = vld [vmem:[#allocation4 + $0x98] sm:$0xf0] }
 0xcb1   : > { %v3269_v37 = vor.u32 %v3549_v32, %v3266_v25 }
 0xcb3   : > { %2341 = vmatpush.bf16.msrb.mxu3 %v3269_v37 }
 0xcb4   : > { %v2083_v34 = vpop.f32.mrf.mxu0 }
 0xcb5   : > { %v3256_v34 = vld [vmem:[#allocation4 + $0x80] sm:$0xf] }
 0xcb6   : > { %v3257_v40 = vor.u32 %v3548_v35, %v3256_v34 }
 0xd0e   : > { %v2087_v41 = vpop.permute.xlu1 %2086 }
 0xd0f   : > { %v2097_v43 = vsel %vm940_vm4, %v1904_v20, %v2087_v41  ;;  %v3281_v20 = vor.u32 %v3554_v18, %v3280_v17  ;;  %v3261_v41 = vor.u32 %v3547_v38, %v3258_v39 }
 0xd11   : > { %2342 = vmatpush.bf16.msrb.mxu3 %v3261_v41 }
 0xd1a   : > { %v2091_v42 = vpop.permute.xlu0 %2090 }
 0xd1b   : > { %v2098_v44 = vsel %vm1188_vm7, %v2097_v43, %v2091_v42  ;;  %v3570_v42 = vld [vmem:[#allocation6 + $0xb8] sm:$0xff] }
 0xd1c   : > { %v3578_v43 = vld [vmem:[#allocation6 + $0xf8] sm:$0xff]  ;;  %2502 = vmatpush.bf16.msra.mxu0 %v3570_v42 }
 0xd1d   : > { %2515 = vmatpush.bf16.msrb.mxu1 %v3578_v43 }
 0xd1f   : > { %v2095_v45 = vpop.permute.xlu1 %2094 }
 0xd20   : > { %v2099_v19 = vsel %vm1190_vm8, %v2098_v44, %v2095_v45 }
 0xd21   : > { %v2100_v46 = vpack.c.bf16 %v2099_v19, %v2099_v19  ;;  %v3569_v19 = vld [vmem:[#allocation6 + $0xb0] sm:$0xff] }
 0xd22   : > { %2503 = vmatpush.bf16.msra.mxu0 %v3569_v19 }
 0xd23   : > { %2179 = vmatmul.bf16.vlgmr.msra.gmra.mxu1 %v2100_v46  ;;  %v3577_v46 = vld [vmem:[#allocation6 + $0xf0] sm:$0xff] }
 0xd24   : > { %2516 = vmatpush.bf16.msrb.mxu1 %v3577_v46 }
 0xda0   : > { %v2180_v48 = vpop.f32.mrf.mxu1 }
 0xda1   : > { %v2181_v49 = vadd.f32 %v3653_v47, %v2180_v48 }
 0xda3   : > { %v2184_v50 = vadd.f32 %v2181_v49, %v4145_v58  ;;  %v3304_v58 = vld [vmem:[#allocation4 + $0xe0] sm:$0xf] }
 0xda4   : > { %v3305_v0 = vor.u32 %v3560_v36, %v3304_v58  ;;  %v3568_v58 = vld [vmem:[#allocation6 + $0xa8] sm:$0xff] }
 0xda5   : > { %2189 = vadd.xlane.f32.xlu2 %v2184_v50  ;;  %v3576_v36 = vld [vmem:[#allocation6 + $0xe8] sm:$0xff]  ;;  %2504 = vmatpush.bf16.msra.mxu0 %v3568_v58 }
 0xda6   : > { %2323 = vmatpush.bf16.msra.mxu2 %v3305_v0  ;;  %2517 = vmatpush.bf16.msrb.mxu1 %v3576_v36  ;;  %v3575_v0 = vld [vmem:[#allocation6 + $0xe0] sm:$0xff]  ;;  %v3593_v36 = vld [vmem:[%s4341_s18 + $0x30] sm:$0xff] }
 0xda8   : > { %v2182_v52 = vpop.f32.mrf.mxu1 }
 0xda9   : > { %2505 = vmatpush.bf16.msra.mxu0 %v3567_v51 }
 0xdaa   : > { %2324 = vmatpush.bf16.msra.mxu2 %v3297_v7  ;;  %2518 = vmatpush.bf16.msrb.mxu1 %v3575_v0  ;;  %v3563_v7 = vld [vmem:[#allocation6 + $0x80] sm:$0xff]  ;;  %v3592_v0 = vld [vmem:[%s4341_s18 + $0x28] sm:$0xff] }
 0xdae   : > { %2325 = vmatpush.bf16.msra.mxu2 %v3289_v13  ;;  %2519 = vmatpush.bf16.msrb.mxu1 %v3574_v2 }
 0xdb2   : > { %2326 = vmatpush.bf16.msra.mxu2 %v3281_v20  ;;  %2520 = vmatpush.bf16.msrb.mxu1 %v3573_v4 }
 0xdb6   : > { %2327 = vmatpush.bf16.msra.mxu2 %v3273_v27  ;;  %2521 = vmatpush.bf16.msrb.mxu1 %v3572_v6  ;;  %v3589_v6 = vld [vmem:[%s4341_s18 + $0x10] sm:$0xff] }
 0xdba   : > { %2328 = vmatpush.bf16.msra.mxu2 %v3265_v33  ;;  %2522 = vmatpush.bf16.msrb.mxu1 %v3571_v8 }
 0xdbe   : > { %2329 = vmatpush.bf16.msra.mxu2 %v3257_v40  ;;  %v3656_v40 = vld [vmem:[%s4336_s13 + $0x1] ss:$0 sm:$0xff] }
 0xe18   : > { %v2190_v59 = vpop.xlane.xlu2 %2189 }
 0xe19   : > { %v2191_v60 = vmul.f32 %v2190_v59, %v3999_v16 }
 0xe1b   : > { %v4230_v62 = vsub.f32 %v2184_v50, %v2191_v60 }
 0xe1d   : > { %v2193_v63 = vmul.f32 %v4230_v62, %v4230_v62 }
 0xe1f   : > { %2194 = vadd.xlane.f32.xlu0 %v2193_v63 }
 0xe92   : > { %v2195_v44 = vpop.xlane.xlu0 %2194 }
 0xe93   : > { %v2196_v45 = vmul.f32 %v2195_v44, %v3999_v16 }
 0xe95   : > { %v2197_v47 = vadd.f32 1e-05, %v2196_v45 }
 0xe97   : > { %3705 = vrsqrt.f32 %v2197_v47  ;;  %vm2204_vm0 = vweird.f32 %v2197_v47 }
 0xe9d   : > { %v3706_v48 = vpop.eup %3705 }
 0xe9e   : > { %v2199_v49 = vmul.f32 %v3706_v48, %v2197_v47  ;;  %vm2205_vm15 = vweird.f32 %v3706_v48  ;;  %v3586_v47 = vld [vmem:[%s4339_s16 + $0x38] sm:$0xff] }
 0xe9f   : > { %vm2206_vm1 = vmor %vm2204_vm0, %vm2205_vm15  ;;  %2630 = vmatpush.bf16.msrb.mxu2 %v3586_v47 }
 0xea0   : > { %v2200_v50 = vmul.f32 %v3706_v48, %v2199_v49 }
 0xea2   : > { %v2201_v52 = vmul.f32 0.5, %v2200_v50 }
 0xea4   : > { %v2202_v53 = vsub.f32 1.5, %v2201_v52 }
 0xea6   : > { %v2203_v54 = vmul.f32 %v3706_v48, %v2202_v53  ;;  %v3585_v53 = vld [vmem:[%s4339_s16 + $0x30] sm:$0xff] }
 0xea7   : > { %2631 = vmatpush.bf16.msrb.mxu2 %v3585_v53 }
 0xea8   : > { %v2207_v56 = vsel %vm2206_vm1, %v3706_v48, %v2203_v54  ;;  %v3584_v54 = vld [vmem:[%s4339_s16 + $0x28] sm:$0xff] }
 0xea9   : > { %v2208_v57 = vmul.f32 %v2207_v56, %v4230_v62  ;;  %v3566_v62 = vld [vmem:[#allocation6 + $0x98] sm:$0xff] }
 0xeaa   : > { %2506 = vmatpush.bf16.msra.mxu0 %v3566_v62  ;;  %v3582_v56 = vld [vmem:[%s4339_s16 + $0x18] sm:$0xff]  ;;  %v3591_v62 = vld [vmem:[%s4341_s18 + $0x20] sm:$0xff] }
 0xeab   : > { %v2212_v59 = vmul.f32 %v3654_v55, %v2208_v57  ;;  %2632 = vmatpush.bf16.msrb.mxu2 %v3584_v54  ;;  %v3583_v55 = vld [vmem:[%s4339_s16 + $0x20] sm:$0xff]  ;;  %v3581_v57 = vld [vmem:[%s4339_s16 + $0x10] sm:$0xff] }
 0xead   : > { %v4242_v60 = vadd.f32 %v3655_v61, %v2212_v59  ;;  %v3580_v61 = vld [vmem:[%s4339_s16 + $0x8] sm:$0xff]  ;;  %v3579_v59 = vld [vmem:[%s4339_s16] sm:$0xff] }
 0xeae   : > { %2507 = vmatpush.bf16.msra.mxu0 %v3565_v3 }
 0xeaf   : > { %v2217_v63 = vpack.c.bf16 %v4242_v60, %v4242_v60  ;;  %2633 = vmatpush.bf16.msrb.mxu2 %v3583_v55 }
 0xeb1   : > { %2330 = vmatmul.bf16.vlgmr.msra.gmra.mxu2 %v2217_v63  ;;  %2343 = vmatmul.bf16.vlgmr.msrb.gmra.mxu3 %v2217_v63 }
 0xeb2   : > { %2508 = vmatpush.bf16.msra.mxu0 %v3564_v5 }
 0xeb3   : > { %2634 = vmatpush.bf16.msrb.mxu2 %v3582_v56 }
 0xeb6   : > { %2509 = vmatpush.bf16.msra.mxu0 %v3563_v7 }
 0xeb7   : > { %2635 = vmatpush.bf16.msrb.mxu2 %v3581_v57 }
 0xebb   : > { %2636 = vmatpush.bf16.msrb.mxu2 %v3580_v61 }
 0xebf   : > { %2637 = vmatpush.bf16.msrb.mxu2 %v3579_v59 }
 0xf34   : > { %v2331_v12 = vpop.f32.mrf.mxu2  ;;  %v2344_v13 = vpop.f32.mrf.mxu3 }
 0xf35   : > { %v2332_v14 = vadd.f32 %v2331_v12, %v2238_v10  ;;  %v2345_v15 = vadd.f32 %v2344_v13, %v2239_v11  ;;  %v3658_v12 = vld [vmem:[%s4338_s15 + $0x1] ss:$0 sm:$0xff] }
 0xf37   : > { %v2350_v17 = vmul.f32 0.044715, %v2332_v14  ;;  %v2351_v18 = vmul.f32 0.044715, %v2345_v15  ;;  %v2348_v32 = vmul.f32 0.5, %v2332_v14  ;;  %v2349_v25 = vmul.f32 0.5, %v2345_v15 }
 0xf39   : > { %v2352_v1 = vmul.f32 %v2350_v17, %v2332_v14  ;;  %v2353_v20 = vmul.f32 %v2351_v18, %v2345_v15  ;;  %v3588_v17 = vld [vmem:[%s4341_s18 + $0x8] sm:$0xff]  ;;  %v3587_v18 = vld [vmem:[%s4341_s18] sm:$0xff] }
 0xf3b   : > { %v2354_v21 = vmul.f32 %v2352_v1, %v2332_v14  ;;  %v2355_v22 = vmul.f32 %v2353_v20, %v2345_v15  ;;  %v3659_v1 = vld [vmem:[%s4364_s22] ss:$0 sm:$0xff] }
 0xf3c   : > { %v2333_v23 = vpop.f32.mrf.mxu2  ;;  %v2346_v24 = vpop.f32.mrf.mxu3 }
 0xf3d   : > { %v2356_v26 = vadd.f32 %v2354_v21, %v2332_v14  ;;  %v2357_v27 = vadd.f32 %v2355_v22, %v2345_v15 }
 0xf3f   : > { %v2358_v28 = vmul.f32 0.7978846, %v2356_v26  ;;  %v2359_v29 = vmul.f32 0.7978846, %v2357_v27  ;;  %v3660_v26 = vld [vmem:[%s4365_s27] ss:$0 sm:$0xff] }
 0xf41   : > { %3707 = vtanh.f32 %v2358_v28 }
 0xf42   : > { %3709 = vtanh.f32 %v2359_v29 }
 0xf47   : > { %v3708_v30 = vpop.eup %3707 }
 0xf48   : > { %v3710_v31 = vpop.eup %3709  ;;  %v2362_v33 = vadd.f32 1.0, %v3708_v30 }
 0xf49   : > { %v2363_v34 = vadd.f32 1.0, %v3710_v31 }
 0xf4a   : > { %v2364_v35 = vmul.f32 %v2362_v33, %v2348_v32 }
 0xf4b   : > { %v2365_v37 = vmul.f32 %v2363_v34, %v2349_v25 }
 0xf4c   : > { %v2366_v38 = vpack.c.bf16 %v2364_v35, %v2364_v35 }
 0xf4d   : > { %v2367_v39 = vpack.c.bf16 %v2365_v37, %v2365_v37 }
 0xf4e   : > { %2510 = vmatmul.bf16.vlgmr.msra.gmra.mxu0 %v2366_v38 }
 0xf4f   : > { %2523 = vmatmul.bf16.vlgmr.msrb.gmra.mxu1 %v2367_v39 }
 0xfcb   : > { %v2511_v41 = vpop.f32.mrf.mxu0 }
 0xfcc   : > { %v2512_v42 = vadd.f32 %v3656_v40, %v2511_v41  ;;  %v2524_v43 = vpop.f32.mrf.mxu1 }
 0xfce   : > { %v2525_v44 = vadd.f32 %v2524_v43, %v2512_v42 }
 0xfd0   : > { %v2528_v45 = vadd.f32 %v2525_v44, %v4242_v60  ;;  %v3594_v60 = vld [vmem:[%s4341_s18 + $0x38] sm:$0xff] }
 0xfd1   : > { %2713 = vmatpush.bf16.msra.mxu3 %v3594_v60 }
 0xfd2   : > { %2533 = vadd.xlane.f32.xlu1 %v2528_v45 }
 0xfd3   : > { %v2513_v19 = vpop.f32.mrf.mxu0 }
 0xfd4   : > { %v2526_v46 = vpop.f32.mrf.mxu1 }
 0xfd5   : > { %2714 = vmatpush.bf16.msra.mxu3 %v3593_v36 }
 0xfd9   : > { %2715 = vmatpush.bf16.msra.mxu3 %v3592_v0 }
 0xfdd   : > { %2716 = vmatpush.bf16.msra.mxu3 %v3591_v62 }
0x1045   : > { %v2534_v48 = vpop.xlane.xlu1 %2533 }
0x1046   : > { %v2535_v49 = vmul.f32 %v2534_v48, %v3999_v16 }
0x1048   : > { %v2536_v50 = vsub.f32 %v2528_v45, %v2535_v49 }
0x104a   : > { %v2537_v52 = vmul.f32 %v2536_v50, %v2536_v50 }
0x104c   : > { %2538 = vadd.xlane.f32.xlu2 %v2537_v52 }
0x10bf   : > { %v2539_v63 = vpop.xlane.xlu2 %2538 }
0x10c0   : > { %v2540_v58 = vmul.f32 %v2539_v63, %v3999_v16  ;;  %v3590_v16 = vld [vmem:[%s4341_s18 + $0x18] sm:$0xff] }
0x10c1   : > { %2717 = vmatpush.bf16.msra.mxu3 %v3590_v16 }
0x10c2   : > { %v2541_v51 = vadd.f32 1e-05, %v2540_v58 }
0x10c4   : > { %3711 = vrsqrt.f32 %v2541_v51  ;;  %vm2548_vm3 = vweird.f32 %v2541_v51 }
0x10c5   : > { %2718 = vmatpush.bf16.msra.mxu3 %v3589_v6 }
0x10c9   : > { %2719 = vmatpush.bf16.msra.mxu3 %v3588_v17 }
0x10ca   : > { %v3712_v2 = vpop.eup %3711 }
0x10cb   : > { %v2543_v3 = vmul.f32 %v3712_v2, %v2541_v51  ;;  %vm2549_vm2 = vweird.f32 %v3712_v2 }
0x10cc   : > { %vm2550_vm4 = vmor %vm2548_vm3, %vm2549_vm2 }
0x10cd   : > { %v2544_v4 = vmul.f32 %v3712_v2, %v2543_v3  ;;  %2720 = vmatpush.bf16.msra.mxu3 %v3587_v18 }
0x10cf   : > { %v2545_v5 = vmul.f32 0.5, %v2544_v4 }
0x10d1   : > { %v2546_v7 = vsub.f32 1.5, %v2545_v5 }
0x10d3   : > { %v2547_v8 = vmul.f32 %v3712_v2, %v2546_v7 }
0x10d5   : > { %v2551_v10 = vsel %vm2550_vm4, %v3712_v2, %v2547_v8 }
0x10d6   : > { %v2552_v11 = vmul.f32 %v2551_v10, %v2536_v50 }
0x10d8   : > { %v2556_v13 = vmul.f32 %v3657_v9, %v2552_v11 }
0x10da   : > { %v2560_v14 = vadd.f32 %v3658_v12, %v2556_v13 }
0x10dc   : > { %v2561_v15 = vpack.c.bf16 %v2560_v14, %v2560_v14 }
0x10de   : > { %2638 = vmatmul.bf16.vlgmr.msrb.gmra.mxu2 %v2561_v15 }
0x1161   : > { %v2639_v20 = vpop.f32.mrf.mxu2 }
0x1162   : > { %v2640_v21 = vadd.f32 %v3659_v1, %v2639_v20 }
0x1164   : > { %v2643_v22 = vmax.f32 %v2640_v21, 0.0 }
0x1166   : > { %v2644_v23 = vpack.c.bf16 %v2643_v22, %v2643_v22 }
0x1168   : > { %2721 = vmatmul.bf16.vlgmr.msra.gmra.mxu3 %v2644_v23 }
0x1169   : > { %v2641_v24 = vpop.f32.mrf.mxu2 }
0x11eb   : > { %v2722_v27 = vpop.f32.mrf.mxu3 }
0x11ec   : > { %v2723_v28 = vadd.f32 %v3660_v26, %v2722_v27 }
0x11ee   : > { %2726 = vst [vmem:[%s688_s24] sm:$0xff] %v2723_v28 }
0x11f3   : > { %v2724_v29 = vpop.f32.mrf.mxu3 }
0x11f4 PF: > { %s4367_s25 = sld [smem:[#allocation9_spill]] }
0x11fa   : > { %s32_s1 = sadd.s32 1, %s4367_s25  }
0x11fb   : > { %p29_p7 = scmp.ge.s32.totalorder %s32_s1, 4  }
0x11fd   :  { %31 = sbr.rel (!%p29_p7) target bundleno = 12 (0xc), region = 158 }
0x1202   :  { %2746 = vsyncpa [#allocation3], 1 }
0x1203   :  { %2748 = vsyncpa [#allocation3 + $0x1], 1 }
0x1204   :  { %2749 = vsyncpa [#allocation5], 1 }

</bundles_post_ra>
